<compile_context>
chip_gen: v7x
topology: tpu7x:2x2x1
jax: 0.10.0
libtpu: 0.0.40
codegen_flags: <defaults>
</compile_context>

<pallas_src>
import jax
import jax.numpy as jnp
from jax.experimental import pallas as pl
from jax.experimental.pallas import tpu as pltpu


_NEG_SLOPE = 0.01  # PyTorch nn.LeakyReLU default negative_slope


def _leaky_relu(x):
    # Equivalent to where(x >= 0, x, slope*x) for slope < 1, but a single VPU max op.
    return jnp.maximum(x, _NEG_SLOPE * x)


# Activation schedule matching nn.Sequential in Fern2:
#   Linear -> LeakyReLU (x6), Linear -> Tanh (x2), Linear (no activation).
_ACTS = [_leaky_relu] * 6 + [jnp.tanh] * 2 + [None]


def fern2_kernel(x_ref, *refs):
    """Transposed layout: activations are (features, batch_tile); batch on lanes.

    refs = (w0, b0, w1, b1, ..., w8, b8, out_ref)
      w_i : (out_i, in_i)   (PyTorch Linear weight layout)
      b_i : (out_i, 1)      (broadcasts over the lane/batch axis)
    """
    out_ref = refs[-1]
    params = refs[:-1]
    h = x_ref[...]                                     # (c_in, tile_b)
    for i in range(9):
        w = params[2 * i][...]
        b = params[2 * i + 1][...]
        h = jnp.dot(w, h, preferred_element_type=jnp.float32) + b
        act = _ACTS[i]
        if act is not None:
            h = act(h)
    out_ref[...] = h.astype(out_ref.dtype)             # (c_out, tile_b), lane-dense store


def fern2_forward(x, weights, biases, *, tile_b=None):
    """x: (N, input_ch); weights[i]: (out_i, in_i); biases[i]: (out_i,). Returns (N, output_ch)."""
    N, c_in = x.shape
    c_out = weights[-1].shape[0]

    if tile_b is None:
        for cand in (2048, 1024, 512, 256, 128):
            if N % cand == 0:
                tile_b = cand
                break
        else:
            tile_b = N
    assert N % tile_b == 0, "batch must be a multiple of the batch tile"
    assert tile_b % 128 == 0 or tile_b == N, "batch tile must be lane-aligned (multiple of 128)"

    # Put batch on the lane axis (layout plumbing outside the kernel).
    x_t = x.T                                          # (c_in, N)

    in_specs = [pl.BlockSpec((c_in, tile_b), lambda i: (0, i))]
    args = [x_t]
    for w, b in zip(weights, biases):
        b2 = b.reshape(-1, 1)
        # Full-array blocks with a constant index_map: fetched once, reused every step.
        in_specs.append(pl.BlockSpec(w.shape, lambda i: (0, 0)))
        in_specs.append(pl.BlockSpec(b2.shape, lambda i: (0, 0)))
        args.append(w)
        args.append(b2)

    out_t = pl.pallas_call(
        fern2_kernel,
        out_shape=jax.ShapeDtypeStruct((c_out, N), x.dtype),
        grid_spec=pltpu.PrefetchScalarGridSpec(
            num_scalar_prefetch=0,
            grid=(N // tile_b,),
            in_specs=in_specs,
            out_specs=pl.BlockSpec((c_out, tile_b), lambda i: (0, i)),
        ),
        compiler_params=pltpu.CompilerParams(
            dimension_semantics=("parallel",)),
    )(*args)

    return out_t.T                                     # (N, c_out)


def init_fern2_params(key, input_ch=9, W=32, output_ch=9, dtype=jnp.float32):
    """PyTorch-style init: weight (out, in), bias (out,), uniform(+-1/sqrt(fan_in))."""
    dims = [input_ch, W, 2 * W, 4 * W, 8 * W, 8 * W, 4 * W, 2 * W, W, output_ch]
    weights, biases = [], []
    for i in range(9):
        fan_in, fan_out = dims[i], dims[i + 1]
        key, kw, kb = jax.random.split(key, 3)
        bound = 1.0 / (fan_in ** 0.5)
        w = jax.random.uniform(kw, (fan_out, fan_in), dtype, minval=-bound, maxval=bound)
        b = jax.random.uniform(kb, (fan_out,), dtype, minval=-bound, maxval=bound)
        weights.append(w)
        biases.append(b)
    return weights, biases


def fern2_reference(x, weights, biases):
    h = x
    for i, (w, b) in enumerate(zip(weights, biases)):
        h = h @ w.T + b                                # PyTorch Linear semantics
        act = _ACTS[i]
        if act is not None:
            h = act(h)
    return h


if __name__ == "__main__":
    key = jax.random.PRNGKey(0)
    key, kx = jax.random.split(key)

    # Small shapes consistent with the module: input_ch=9, output_ch=9, W=32 (scaled down).
    input_ch, W, output_ch = 9, 32, 9
    batch = 256
    tile_b = 128                                       # grid of 2 parallel steps (keeps both v7x TCs busy)

    x = jax.random.normal(kx, (batch, input_ch), dtype=jnp.float32)
    weights, biases = init_fern2_params(key, input_ch=input_ch, W=W, output_ch=output_ch)

    out = fern2_forward(x, weights, biases, tile_b=tile_b)
    out = jax.block_until_ready(out)

    ref = fern2_reference(x, weights, biases)
    assert out.shape == (batch, output_ch)
    assert jnp.allclose(out, ref, atol=1e-4, rtol=1e-4), "mismatch vs reference"

    print("KERNEL_OK")
</pallas_src>

<mosaic_0001>
module attributes {stable_mosaic.version = 11 : i64} {
  func.func @fern2_kernel(%arg0: i32, %arg1: memref<9x128xf32, #tpu.memory_space<vmem>>, %arg2: memref<32x9xf32, #tpu.memory_space<vmem>>, %arg3: memref<32x1xf32, #tpu.memory_space<vmem>>, %arg4: memref<64x32xf32, #tpu.memory_space<vmem>>, %arg5: memref<64x1xf32, #tpu.memory_space<vmem>>, %arg6: memref<128x64xf32, #tpu.memory_space<vmem>>, %arg7: memref<128x1xf32, #tpu.memory_space<vmem>>, %arg8: memref<256x128xf32, #tpu.memory_space<vmem>>, %arg9: memref<256x1xf32, #tpu.memory_space<vmem>>, %arg10: memref<256x256xf32, #tpu.memory_space<vmem>>, %arg11: memref<256x1xf32, #tpu.memory_space<vmem>>, %arg12: memref<128x256xf32, #tpu.memory_space<vmem>>, %arg13: memref<128x1xf32, #tpu.memory_space<vmem>>, %arg14: memref<64x128xf32, #tpu.memory_space<vmem>>, %arg15: memref<64x1xf32, #tpu.memory_space<vmem>>, %arg16: memref<32x64xf32, #tpu.memory_space<vmem>>, %arg17: memref<32x1xf32, #tpu.memory_space<vmem>>, %arg18: memref<9x32xf32, #tpu.memory_space<vmem>>, %arg19: memref<9x1xf32, #tpu.memory_space<vmem>>, %arg20: memref<9x128xf32, #tpu.memory_space<vmem>>) attributes {dimension_semantics = [#tpu.dimension_semantics<parallel>], iteration_bounds = array<i64: 2>, scalar_prefetch = 0 : i64, scratch_operands = 0 : i64, tpu.core_type = #tpu.core_type<tc>, window_params = [{transform_indices = @transform_0, window_bounds = array<i64: 9, 128>}, {pipeline_mode = #tpu.pipeline_mode<synchronous>, transform_indices = @transform_1, window_bounds = array<i64: 32, 9>}, {pipeline_mode = #tpu.pipeline_mode<synchronous>, transform_indices = @transform_2, window_bounds = array<i64: 32, 1>}, {pipeline_mode = #tpu.pipeline_mode<synchronous>, transform_indices = @transform_3, window_bounds = array<i64: 64, 32>}, {pipeline_mode = #tpu.pipeline_mode<synchronous>, transform_indices = @transform_4, window_bounds = array<i64: 64, 1>}, {pipeline_mode = #tpu.pipeline_mode<synchronous>, transform_indices = @transform_5, window_bounds = array<i64: 128, 64>}, {pipeline_mode = #tpu.pipeline_mode<synchronous>, transform_indices = @transform_6, window_bounds = array<i64: 128, 1>}, {pipeline_mode = #tpu.pipeline_mode<synchronous>, transform_indices = @transform_7, window_bounds = array<i64: 256, 128>}, {pipeline_mode = #tpu.pipeline_mode<synchronous>, transform_indices = @transform_8, window_bounds = array<i64: 256, 1>}, {pipeline_mode = #tpu.pipeline_mode<synchronous>, transform_indices = @transform_9, window_bounds = array<i64: 256, 256>}, {pipeline_mode = #tpu.pipeline_mode<synchronous>, transform_indices = @transform_10, window_bounds = array<i64: 256, 1>}, {pipeline_mode = #tpu.pipeline_mode<synchronous>, transform_indices = @transform_11, window_bounds = array<i64: 128, 256>}, {pipeline_mode = #tpu.pipeline_mode<synchronous>, transform_indices = @transform_12, window_bounds = array<i64: 128, 1>}, {pipeline_mode = #tpu.pipeline_mode<synchronous>, transform_indices = @transform_13, window_bounds = array<i64: 64, 128>}, {pipeline_mode = #tpu.pipeline_mode<synchronous>, transform_indices = @transform_14, window_bounds = array<i64: 64, 1>}, {pipeline_mode = #tpu.pipeline_mode<synchronous>, transform_indices = @transform_15, window_bounds = array<i64: 32, 64>}, {pipeline_mode = #tpu.pipeline_mode<synchronous>, transform_indices = @transform_16, window_bounds = array<i64: 32, 1>}, {pipeline_mode = #tpu.pipeline_mode<synchronous>, transform_indices = @transform_17, window_bounds = array<i64: 9, 32>}, {pipeline_mode = #tpu.pipeline_mode<synchronous>, transform_indices = @transform_18, window_bounds = array<i64: 9, 1>}, {transform_indices = @transform_19, window_bounds = array<i64: 9, 128>}]} {
    %c0 = arith.constant 0 : index
    %c0_0 = arith.constant 0 : index
    %0 = vector.load %arg1[%c0, %c0_0] : memref<9x128xf32, #tpu.memory_space<vmem>>, vector<9x128xf32>
    %c0_1 = arith.constant 0 : index
    %c0_2 = arith.constant 0 : index
    %1 = vector.load %arg2[%c0_1, %c0_2] : memref<32x9xf32, #tpu.memory_space<vmem>>, vector<32x9xf32>
    %c0_3 = arith.constant 0 : index
    %c0_4 = arith.constant 0 : index
    %2 = vector.load %arg3[%c0_3, %c0_4] : memref<32x1xf32, #tpu.memory_space<vmem>>, vector<32x1xf32>
    %cst = arith.constant dense<0.000000e+00> : vector<32x128xf32>
    %3 = tpu.matmul %1, %0, %cst {dimension_numbers = #tpu.dot_dimension_numbers<[1], [0], [0], [1], [0, 0, 1, 1], [], []>} : vector<32x9xf32>, vector<9x128xf32>, vector<32x128xf32> -> vector<32x128xf32>
    %4 = vector.broadcast %2 : vector<32x1xf32> to vector<32x128xf32>
    %5 = arith.addf %3, %4 : vector<32x128xf32>
    %cst_5 = arith.constant 0.00999999977 : f32
    %6 = vector.broadcast %cst_5 : f32 to vector<32x128xf32>
    %7 = arith.mulf %6, %5 : vector<32x128xf32>
    %8 = arith.maximumf %5, %7 : vector<32x128xf32>
    %c0_6 = arith.constant 0 : index
    %c0_7 = arith.constant 0 : index
    %9 = vector.load %arg4[%c0_6, %c0_7] : memref<64x32xf32, #tpu.memory_space<vmem>>, vector<64x32xf32>
    %c0_8 = arith.constant 0 : index
    %c0_9 = arith.constant 0 : index
    %10 = vector.load %arg5[%c0_8, %c0_9] : memref<64x1xf32, #tpu.memory_space<vmem>>, vector<64x1xf32>
    %cst_10 = arith.constant dense<0.000000e+00> : vector<64x128xf32>
    %11 = tpu.matmul %9, %8, %cst_10 {dimension_numbers = #tpu.dot_dimension_numbers<[1], [0], [0], [1], [0, 0, 1, 1], [], []>} : vector<64x32xf32>, vector<32x128xf32>, vector<64x128xf32> -> vector<64x128xf32>
    %12 = vector.broadcast %10 : vector<64x1xf32> to vector<64x128xf32>
    %13 = arith.addf %11, %12 : vector<64x128xf32>
    %cst_11 = arith.constant 0.00999999977 : f32
    %14 = vector.broadcast %cst_11 : f32 to vector<64x128xf32>
    %15 = arith.mulf %14, %13 : vector<64x128xf32>
    %16 = arith.maximumf %13, %15 : vector<64x128xf32>
    %c0_12 = arith.constant 0 : index
    %c0_13 = arith.constant 0 : index
    %17 = vector.load %arg6[%c0_12, %c0_13] : memref<128x64xf32, #tpu.memory_space<vmem>>, vector<128x64xf32>
    %c0_14 = arith.constant 0 : index
    %c0_15 = arith.constant 0 : index
    %18 = vector.load %arg7[%c0_14, %c0_15] : memref<128x1xf32, #tpu.memory_space<vmem>>, vector<128x1xf32>
    %cst_16 = arith.constant dense<0.000000e+00> : vector<128x128xf32>
    %19 = tpu.matmul %17, %16, %cst_16 {dimension_numbers = #tpu.dot_dimension_numbers<[1], [0], [0], [1], [0, 0, 1, 1], [], []>} : vector<128x64xf32>, vector<64x128xf32>, vector<128x128xf32> -> vector<128x128xf32>
    %20 = vector.broadcast %18 : vector<128x1xf32> to vector<128x128xf32>
    %21 = arith.addf %19, %20 : vector<128x128xf32>
    %cst_17 = arith.constant 0.00999999977 : f32
    %22 = vector.broadcast %cst_17 : f32 to vector<128x128xf32>
    %23 = arith.mulf %22, %21 : vector<128x128xf32>
    %24 = arith.maximumf %21, %23 : vector<128x128xf32>
    %c0_18 = arith.constant 0 : index
    %c0_19 = arith.constant 0 : index
    %25 = vector.load %arg8[%c0_18, %c0_19] : memref<256x128xf32, #tpu.memory_space<vmem>>, vector<256x128xf32>
    %c0_20 = arith.constant 0 : index
    %c0_21 = arith.constant 0 : index
    %26 = vector.load %arg9[%c0_20, %c0_21] : memref<256x1xf32, #tpu.memory_space<vmem>>, vector<256x1xf32>
    %cst_22 = arith.constant dense<0.000000e+00> : vector<256x128xf32>
    %27 = tpu.matmul %25, %24, %cst_22 {dimension_numbers = #tpu.dot_dimension_numbers<[1], [0], [0], [1], [0, 0, 1, 1], [], []>} : vector<256x128xf32>, vector<128x128xf32>, vector<256x128xf32> -> vector<256x128xf32>
    %28 = vector.broadcast %26 : vector<256x1xf32> to vector<256x128xf32>
    %29 = arith.addf %27, %28 : vector<256x128xf32>
    %cst_23 = arith.constant 0.00999999977 : f32
    %30 = vector.broadcast %cst_23 : f32 to vector<256x128xf32>
    %31 = arith.mulf %30, %29 : vector<256x128xf32>
    %32 = arith.maximumf %29, %31 : vector<256x128xf32>
    %c0_24 = arith.constant 0 : index
    %c0_25 = arith.constant 0 : index
    %33 = vector.load %arg10[%c0_24, %c0_25] : memref<256x256xf32, #tpu.memory_space<vmem>>, vector<256x256xf32>
    %c0_26 = arith.constant 0 : index
    %c0_27 = arith.constant 0 : index
    %34 = vector.load %arg11[%c0_26, %c0_27] : memref<256x1xf32, #tpu.memory_space<vmem>>, vector<256x1xf32>
    %cst_28 = arith.constant dense<0.000000e+00> : vector<256x128xf32>
    %35 = tpu.matmul %33, %32, %cst_28 {dimension_numbers = #tpu.dot_dimension_numbers<[1], [0], [0], [1], [0, 0, 1, 1], [], []>} : vector<256x256xf32>, vector<256x128xf32>, vector<256x128xf32> -> vector<256x128xf32>
    %36 = vector.broadcast %34 : vector<256x1xf32> to vector<256x128xf32>
    %37 = arith.addf %35, %36 : vector<256x128xf32>
    %cst_29 = arith.constant 0.00999999977 : f32
    %38 = vector.broadcast %cst_29 : f32 to vector<256x128xf32>
    %39 = arith.mulf %38, %37 : vector<256x128xf32>
    %40 = arith.maximumf %37, %39 : vector<256x128xf32>
    %c0_30 = arith.constant 0 : index
    %c0_31 = arith.constant 0 : index
    %41 = vector.load %arg12[%c0_30, %c0_31] : memref<128x256xf32, #tpu.memory_space<vmem>>, vector<128x256xf32>
    %c0_32 = arith.constant 0 : index
    %c0_33 = arith.constant 0 : index
    %42 = vector.load %arg13[%c0_32, %c0_33] : memref<128x1xf32, #tpu.memory_space<vmem>>, vector<128x1xf32>
    %cst_34 = arith.constant dense<0.000000e+00> : vector<128x128xf32>
    %43 = tpu.matmul %41, %40, %cst_34 {dimension_numbers = #tpu.dot_dimension_numbers<[1], [0], [0], [1], [0, 0, 1, 1], [], []>} : vector<128x256xf32>, vector<256x128xf32>, vector<128x128xf32> -> vector<128x128xf32>
    %44 = vector.broadcast %42 : vector<128x1xf32> to vector<128x128xf32>
    %45 = arith.addf %43, %44 : vector<128x128xf32>
    %cst_35 = arith.constant 0.00999999977 : f32
    %46 = vector.broadcast %cst_35 : f32 to vector<128x128xf32>
    %47 = arith.mulf %46, %45 : vector<128x128xf32>
    %48 = arith.maximumf %45, %47 : vector<128x128xf32>
    %c0_36 = arith.constant 0 : index
    %c0_37 = arith.constant 0 : index
    %49 = vector.load %arg14[%c0_36, %c0_37] : memref<64x128xf32, #tpu.memory_space<vmem>>, vector<64x128xf32>
    %c0_38 = arith.constant 0 : index
    %c0_39 = arith.constant 0 : index
    %50 = vector.load %arg15[%c0_38, %c0_39] : memref<64x1xf32, #tpu.memory_space<vmem>>, vector<64x1xf32>
    %cst_40 = arith.constant dense<0.000000e+00> : vector<64x128xf32>
    %51 = tpu.matmul %49, %48, %cst_40 {dimension_numbers = #tpu.dot_dimension_numbers<[1], [0], [0], [1], [0, 0, 1, 1], [], []>} : vector<64x128xf32>, vector<128x128xf32>, vector<64x128xf32> -> vector<64x128xf32>
    %52 = vector.broadcast %50 : vector<64x1xf32> to vector<64x128xf32>
    %53 = arith.addf %51, %52 : vector<64x128xf32>
    %54 = math.tanh %53 : vector<64x128xf32>
    %c0_41 = arith.constant 0 : index
    %c0_42 = arith.constant 0 : index
    %55 = vector.load %arg16[%c0_41, %c0_42] : memref<32x64xf32, #tpu.memory_space<vmem>>, vector<32x64xf32>
    %c0_43 = arith.constant 0 : index
    %c0_44 = arith.constant 0 : index
    %56 = vector.load %arg17[%c0_43, %c0_44] : memref<32x1xf32, #tpu.memory_space<vmem>>, vector<32x1xf32>
    %cst_45 = arith.constant dense<0.000000e+00> : vector<32x128xf32>
    %57 = tpu.matmul %55, %54, %cst_45 {dimension_numbers = #tpu.dot_dimension_numbers<[1], [0], [0], [1], [0, 0, 1, 1], [], []>} : vector<32x64xf32>, vector<64x128xf32>, vector<32x128xf32> -> vector<32x128xf32>
    %58 = vector.broadcast %56 : vector<32x1xf32> to vector<32x128xf32>
    %59 = arith.addf %57, %58 : vector<32x128xf32>
    %60 = math.tanh %59 : vector<32x128xf32>
    %c0_46 = arith.constant 0 : index
    %c0_47 = arith.constant 0 : index
    %61 = vector.load %arg18[%c0_46, %c0_47] : memref<9x32xf32, #tpu.memory_space<vmem>>, vector<9x32xf32>
    %c0_48 = arith.constant 0 : index
    %c0_49 = arith.constant 0 : index
    %62 = vector.load %arg19[%c0_48, %c0_49] : memref<9x1xf32, #tpu.memory_space<vmem>>, vector<9x1xf32>
    %cst_50 = arith.constant dense<0.000000e+00> : vector<9x128xf32>
    %63 = tpu.matmul %61, %60, %cst_50 {dimension_numbers = #tpu.dot_dimension_numbers<[1], [0], [0], [1], [0, 0, 1, 1], [], []>} : vector<9x32xf32>, vector<32x128xf32>, vector<9x128xf32> -> vector<9x128xf32>
    %64 = vector.broadcast %62 : vector<9x1xf32> to vector<9x128xf32>
    %65 = arith.addf %63, %64 : vector<9x128xf32>
    %c0_51 = arith.constant 0 : index
    %c0_52 = arith.constant 0 : index
    %66 = vector.load %arg20[%c0_51, %c0_52] : memref<9x128xf32, #tpu.memory_space<vmem>>, vector<9x128xf32>
    tpu.vector_store %arg20[%c0_51, %c0_52], %65 {strides = array<i32>} : memref<9x128xf32, #tpu.memory_space<vmem>>, vector<9x128xf32>,
    return
  }
  func.func @transform_0(%arg0: i32) -> (i32, i32) {
    %c0_i32 = arith.constant 0 : i32
    %c0_i32_0 = arith.constant 0 : i32
    return %c0_i32, %arg0 : i32, i32
  }
  func.func @transform_1(%arg0: i32) -> (i32, i32) {
    %c0_i32 = arith.constant 0 : i32
    %c0_i32_0 = arith.constant 0 : i32
    %c0_i32_1 = arith.constant 0 : i32
    return %c0_i32, %c0_i32_0 : i32, i32
  }
  func.func @transform_2(%arg0: i32) -> (i32, i32) {
    %c0_i32 = arith.constant 0 : i32
    %c0_i32_0 = arith.constant 0 : i32
    %c0_i32_1 = arith.constant 0 : i32
    return %c0_i32, %c0_i32_0 : i32, i32
  }
  func.func @transform_3(%arg0: i32) -> (i32, i32) {
    %c0_i32 = arith.constant 0 : i32
    %c0_i32_0 = arith.constant 0 : i32
    %c0_i32_1 = arith.constant 0 : i32
    return %c0_i32, %c0_i32_0 : i32, i32
  }
  func.func @transform_4(%arg0: i32) -> (i32, i32) {
    %c0_i32 = arith.constant 0 : i32
    %c0_i32_0 = arith.constant 0 : i32
    %c0_i32_1 = arith.constant 0 : i32
    return %c0_i32, %c0_i32_0 : i32, i32
  }
  func.func @transform_5(%arg0: i32) -> (i32, i32) {
    %c0_i32 = arith.constant 0 : i32
    %c0_i32_0 = arith.constant 0 : i32
    %c0_i32_1 = arith.constant 0 : i32
    return %c0_i32, %c0_i32_0 : i32, i32
  }
  func.func @transform_6(%arg0: i32) -> (i32, i32) {
    %c0_i32 = arith.constant 0 : i32
    %c0_i32_0 = arith.constant 0 : i32
    %c0_i32_1 = arith.constant 0 : i32
    return %c0_i32, %c0_i32_0 : i32, i32
  }
  func.func @transform_7(%arg0: i32) -> (i32, i32) {
    %c0_i32 = arith.constant 0 : i32
    %c0_i32_0 = arith.constant 0 : i32
    %c0_i32_1 = arith.constant 0 : i32
    return %c0_i32, %c0_i32_0 : i32, i32
  }
  func.func @transform_8(%arg0: i32) -> (i32, i32) {
    %c0_i32 = arith.constant 0 : i32
    %c0_i32_0 = arith.constant 0 : i32
    %c0_i32_1 = arith.constant 0 : i32
    return %c0_i32, %c0_i32_0 : i32, i32
  }
  func.func @transform_9(%arg0: i32) -> (i32, i32) {
    %c0_i32 = arith.constant 0 : i32
    %c0_i32_0 = arith.constant 0 : i32
    %c0_i32_1 = arith.constant 0 : i32
    return %c0_i32, %c0_i32_0 : i32, i32
  }
  func.func @transform_10(%arg0: i32) -> (i32, i32) {
    %c0_i32 = arith.constant 0 : i32
    %c0_i32_0 = arith.constant 0 : i32
    %c0_i32_1 = arith.constant 0 : i32
    return %c0_i32, %c0_i32_0 : i32, i32
  }
  func.func @transform_11(%arg0: i32) -> (i32, i32) {
    %c0_i32 = arith.constant 0 : i32
    %c0_i32_0 = arith.constant 0 : i32
    %c0_i32_1 = arith.constant 0 : i32
    return %c0_i32, %c0_i32_0 : i32, i32
  }
  func.func @transform_12(%arg0: i32) -> (i32, i32) {
    %c0_i32 = arith.constant 0 : i32
    %c0_i32_0 = arith.constant 0 : i32
    %c0_i32_1 = arith.constant 0 : i32
    return %c0_i32, %c0_i32_0 : i32, i32
  }
  func.func @transform_13(%arg0: i32) -> (i32, i32) {
    %c0_i32 = arith.constant 0 : i32
    %c0_i32_0 = arith.constant 0 : i32
    %c0_i32_1 = arith.constant 0 : i32
    return %c0_i32, %c0_i32_0 : i32, i32
  }
  func.func @transform_14(%arg0: i32) -> (i32, i32) {
    %c0_i32 = arith.constant 0 : i32
    %c0_i32_0 = arith.constant 0 : i32
    %c0_i32_1 = arith.constant 0 : i32
    return %c0_i32, %c0_i32_0 : i32, i32
  }
  func.func @transform_15(%arg0: i32) -> (i32, i32) {
    %c0_i32 = arith.constant 0 : i32
    %c0_i32_0 = arith.constant 0 : i32
    %c0_i32_1 = arith.constant 0 : i32
    return %c0_i32, %c0_i32_0 : i32, i32
  }
  func.func @transform_16(%arg0: i32) -> (i32, i32) {
    %c0_i32 = arith.constant 0 : i32
    %c0_i32_0 = arith.constant 0 : i32
    %c0_i32_1 = arith.constant 0 : i32
    return %c0_i32, %c0_i32_0 : i32, i32
  }
  func.func @transform_17(%arg0: i32) -> (i32, i32) {
    %c0_i32 = arith.constant 0 : i32
    %c0_i32_0 = arith.constant 0 : i32
    %c0_i32_1 = arith.constant 0 : i32
    return %c0_i32, %c0_i32_0 : i32, i32
  }
  func.func @transform_18(%arg0: i32) -> (i32, i32) {
    %c0_i32 = arith.constant 0 : i32
    %c0_i32_0 = arith.constant 0 : i32
    %c0_i32_1 = arith.constant 0 : i32
    return %c0_i32, %c0_i32_0 : i32, i32
  }
  func.func @transform_19(%arg0: i32) -> (i32, i32) {
    %c0_i32 = arith.constant 0 : i32
    %c0_i32_0 = arith.constant 0 : i32
    return %c0_i32, %arg0 : i32, i32
  }
}

</mosaic_0001>

<bundles_post_ra>
// kernel: tpu_custom_call.1
= control target key start
LH: loop header
LB: loop body
LE: loop exit
PB: predicated region body
PF: predicated region fallthrough
CT: control target
= control target key end

     0   :  { %s5267_s0 = inlined_call_operand.vmem [shape: f32[9,256], index: 0, kind: input, shape index: {}]   ;;  %s5268_s1 = inlined_call_operand.vmem [shape: f32[32,9], index: 1, kind: input, shape index: {}]   ;;  %s5269_s2 = inlined_call_operand.vmem [shape: f32[32,1], index: 2, kind: input, shape index: {}]   ;;  %s5270_s3 = inlined_call_operand.vmem [shape: f32[64,32], index: 3, kind: input, shape index: {}]   ;;  %s5271_s4 = inlined_call_operand.vmem [shape: f32[64,1], index: 4, kind: input, shape index: {}]   ;;  %s5272_s5 = inlined_call_operand.vmem [shape: f32[128,64], index: 5, kind: input, shape index: {}]   ;;  %s5273_s6 = inlined_call_operand.vmem [shape: f32[128,1], index: 6, kind: input, shape index: {}]   ;;  %s5274_s7 = inlined_call_operand.vmem [shape: f32[256,128], index: 7, kind: input, shape index: {}]   ;;  %s5275_s8 = inlined_call_operand.vmem [shape: f32[256,1], index: 8, kind: input, shape index: {}]   ;;  %s5276_s9 = inlined_call_operand.vmem [shape: f32[256,256], index: 9, kind: input, shape index: {}]   ;;  %s5277_s10 = inlined_call_operand.vmem [shape: f32[256,1], index: 10, kind: input, shape index: {}]   ;;  %s5278_s11 = inlined_call_operand.vmem [shape: f32[128,256], index: 11, kind: input, shape index: {}]   ;;  %s5279_s12 = inlined_call_operand.vmem [shape: f32[128,1], index: 12, kind: input, shape index: {}]   ;;  %s5280_s13 = inlined_call_operand.vmem [shape: f32[64,128], index: 13, kind: input, shape index: {}]   ;;  %s5281_s14 = inlined_call_operand.vmem [shape: f32[64,1], index: 14, kind: input, shape index: {}]   ;;  %s5282_s15 = inlined_call_operand.vmem [shape: f32[32,64], index: 15, kind: input, shape index: {}]   ;;  %s5283_s16 = inlined_call_operand.vmem [shape: f32[32,1], index: 16, kind: input, shape index: {}]   ;;  %s5284_s17 = inlined_call_operand.vmem [shape: f32[9,32], index: 17, kind: input, shape index: {}]   ;;  %s5285_s18 = inlined_call_operand.vmem [shape: f32[9,1], index: 18, kind: input, shape index: {}]   ;;  %s5286_s19 = inlined_call_operand.hbm [shape: f32[9,256], index: 19, kind: output, shape index: {}]  }
   0x1   :  { %5298 = sst [smem:[#allocation10_spill]] %s5267_s0 }
   0x2   :  { %5299 = sst [smem:[#allocation11_spill]] %s5268_s1 }
   0x3   :  { %5300 = sst [smem:[#allocation12_spill]] %s5269_s2 }
   0x4   :  { %5301 = sst [smem:[#allocation13_spill]] %s5270_s3 }
   0x5   :  { %5302 = sst [smem:[#allocation14_spill]] %s5271_s4 }
   0x6   :  { %5303 = sst [smem:[#allocation15_spill]] %s5272_s5 }
   0x7   :  { %24 = vsyncpa [#allocation4], 0 }
   0x8   :  { %26 = vsyncpa [#allocation4 + $0x1], 0  ;;  %s4084_s0 = smov 0   ;;  %s4086_s30 = smov 0  }
   0x9   :  { %s4088_s20 = smov 0   ;;  %s4090_s21 = smov 0  }
   0xa LB: > { %5304 = sst [smem:[#allocation6_spill]] %s3971_s20  ;;  %s5290_s1 = sadd.s32 4294967295, %s3975_s21   ;;  %s3975_s21 = sphi %s4090_s21, %s5319_s21   ;;  %s3971_s20 = sphi %s4088_s20, %s5321_s20   ;;  %s3967_s30 = sphi %s4086_s30, %s5323_s30   ;;  %s3963_s0 = sphi %s4084_s0, %s5322_s0  }
   0xb   : > { %s3158_s22 = sadd.s32 4294967294, %s3975_s21   ;;  %s4107_s2 = sadd.s32 1, %s3975_s21  }
   0xc   : > { %5305 = sst [smem:[#allocation7_spill]] %s4107_s2  ;;  %s39_s23 = sadd.s32 1, %s3971_s20 }
   0xd   : > { %s36_s24 = ssub.s32 %s3975_s21, %s4107_s2  ;;  %p46_p0 = scmp.ne.s32.totalorder %s3971_s20, %s3967_s30 }
   0xe   : > { %p37_p1 = scmp.eq.s32.totalorder %s36_s24, 0  ;;  %p47_p2 = scmp.eq.s32.totalorder %s3975_s21, 0 }
   0xf   : > { %p454_p3 = scmp.eq.s32.totalorder %s5290_s1, 1  ;;  %p459_p4 = scmp.ne.s32.totalorder %s3967_s30, %s3963_s0 }
  0x10   : > { %s4120_s25 = scalar_select %p37_p1, %s3971_s20, %s39_s23  }
  0x11   : > { %p48_p5 = por %p47_p2, %p46_p0  ;;  %p4122_p6 = por %p454_p3, %p46_p0 }
  0x12   : > { %5306 = sst [smem:[#allocation8_spill]] %s4120_s25  ;;  %p460_p7 = scmp.eq.s32.totalorder %s3158_s22, 1 }
  0x13   : > { %p3160_p9 = scmp.ge.s32.totalorder %s3975_s21, 2 }
  0x14   : > { %p4126_p8 = por %p460_p7, %p459_p4 }
  0x15   : > { %530 = sbr.rel (%p3160_p9) target bundleno = 39 (0x27), region = 88 }
  0x16   : > { %s5308_s26 = scalar_select %p4126_p8, 1, 0 }
  0x18   : > { %5309 = sst [smem:[#allocation9_spill]] %s5308_s26 }
  0x1c   : > { %533 = sbr.rel (!%p48_p5) target bundleno = 39 (0x27), region = 92  ;;  %s535_s27 = sand.u32 (%p48_p5), 1, %s3971_s20  }
  0x1d   : > { %s3162_s28 = sshll.u32 (%p48_p5), %s3975_s21, 3  ;;  %s3161_s29 = sshll.u32 (%p48_p5), %s535_s27, 4 }
  0x1e   : > { %s5310_s1 = sld [smem:[#allocation10_spill]] (%p48_p5)  ;;  %s537_s22 = scalar_lea.vmem (%p48_p5), [#allocation2], %s3161_s29 }
  0x24   : > { %s539_s25 = scalar_lea.vmem %s5310_s1, %s3162_s28 }
  0x25   : > { %v569_v0 = vld [vmem:[%s539_s25] sm:$0xff]  ;;  %v571_v1 = vld [vmem:[%s539_s25 + $0x10] sm:$0xff] }
  0x26   : > { %570 = vst [vmem:[%s537_s22] sm:$0xff] %v569_v0  ;;  %572 = vst [vmem:[%s537_s22 + $0x8] sm:$0xff] %v571_v1 }
  0x27 PF: > { %p3163_p10 = scmp.ge.s32.totalorder %s3975_s21, 1  ;;  %p577_p11 = scmp.lt.s32.totalorder %s3975_s21, 3 }
  0x29   : > { %p578_p12 = pnand %p3163_p10, %p577_p11 }
  0x2a   : > { %s5311_s27 = sld [smem:[#allocation12_spill]] (!%p578_p12)  ;;  %s5295_s25 = sand.u32 (!%p578_p12), 1, %s3967_s30   ;;  %v3977_v4 = vmov (!%p578_p12), 0   ;;  %vm682_vm0 = vcmask (!%p578_p12), 1040384   ;;  %vm669_vm1 = vcmask (!%p578_p12), 72704   ;;  %vm3978_vm2 = vmmov (!%p578_p12), 1  }
  0x2b   : > { %581 = sbr.rel (%p578_p12) target bundleno = 2403 (0x963), region = 130  ;;  %3888 = vset.pattern.permute.xlu1 (!%p578_p12), %v3977_v4  ;;  %3887 = vset.pattern.permute.xlu0 (!%p578_p12), %v3977_v4  ;;  %s4149_s29 = sshll.u32 (!%p578_p12), %s5295_s25, 4  ;;  %vm3645_vm3 = vmpackc.low (!%p578_p12), %vm682_vm0, %vm3978_vm2  ;;  %v998_v22 = vld [vmem:[%s5273_s6 + $0x8] sm:$0xff] (!%p578_p12)  ;;  %v997_v23 = vld [vmem:[%s5273_s6] sm:$0xff] (!%p578_p12)  ;;  %vm835_vm4 = vcmask (!%p578_p12), 261120   ;;  %vm1093_vm5 = vcmask (!%p578_p12), 523264  }
  0x2c   : > { %s5312_s22 = sld [smem:[#allocation11_spill]] (!%p578_p12)  ;;  %s586_s26 = scalar_lea.vmem (!%p578_p12), [#allocation2], %s4149_s29  ;;  %v1000_v24 = vld [vmem:[%s5273_s6 + $0x18] sm:$0xff] (!%p578_p12)  ;;  %v999_v25 = vld [vmem:[%s5273_s6 + $0x10] sm:$0xff] (!%p578_p12)  ;;  %v1002_v26 = vld [vmem:[%s5273_s6 + $0x28] sm:$0xff] (!%p578_p12) }
  0x2d   : > { %v639_v8 = vld [vmem:[%s586_s26] sm:$0xff] (!%p578_p12)  ;;  %v640_v9 = vld [vmem:[%s586_s26 + $0x8] sm:$0x1] (!%p578_p12)  ;;  %s5313_s4 = sld [smem:[#allocation14_spill]] (!%p578_p12)  ;;  %s5315_s5 = sld [smem:[#allocation15_spill]] (!%p578_p12) }
  0x2e   : > { %v3644_v10 = vpack.c.bf16 (!%p578_p12), %v640_v9, %v639_v8  ;;  %v1001_v27 = vld [vmem:[%s5273_s6 + $0x20] sm:$0xff] (!%p578_p12)  ;;  %v1004_v28 = vld [vmem:[%s5273_s6 + $0x38] sm:$0xff] (!%p578_p12)  ;;  %v1003_v29 = vld [vmem:[%s5273_s6 + $0x30] sm:$0xff] (!%p578_p12)  ;;  %s638_s25 = scalar_lea.vmem (!%p578_p12), [#allocation3], %s4149_s29  ;;  %s5317_s29 = sand.u32 (!%p578_p12), 1, %s3967_s30  }
  0x2f   : > { %v1006_v30 = vld [vmem:[%s5273_s6 + $0x48] sm:$0xff] (!%p578_p12)  ;;  %v1005_v31 = vld [vmem:[%s5273_s6 + $0x40] sm:$0xff] (!%p578_p12)  ;;  %v1008_v32 = vld [vmem:[%s5273_s6 + $0x58] sm:$0xff] (!%p578_p12)  ;;  %s3090_s28 = sshll.u32 (!%p578_p12), %s638_s25, 4  ;;  %s5225_s2 = scalar_lea.sflag (!%p578_p12), [#allocation4], %s5317_s29  ;;  %s5216_s28 = int_to_ptr.vmem [resolvable:$true] %s3090_s28 }
  0x30   : > { %v647_v2 = vld [vmem:[%s5311_s27 + $0x10] sm:$0xff] (!%p578_p12)  ;;  %v645_v3 = vld [vmem:[%s5311_s27] sm:$0xff] (!%p578_p12)  ;;  %v648_v6 = vld [vmem:[%s5311_s27 + $0x18] sm:$0xff] (!%p578_p12)  ;;  %3646 = vmatprep.subr.msk.bf16.mxu1 (!%p578_p12), %vm3645_vm3, %v3644_v10  ;;  %s3980_s1 = smov (!%p578_p12), [#allocation3]  }
  0x31   : > { %661 = vperm.xlu1 (!%p578_p12), %3888, %v647_v2   ;;  %651 = vperm.xlu0 (!%p578_p12), %3887, %v645_v3   ;;  %v646_v7 = vld [vmem:[%s5311_s27 + $0x8] sm:$0xff] (!%p578_p12)  ;;  %v1007_v33 = vld [vmem:[%s5273_s6 + $0x50] sm:$0xff] (!%p578_p12)  ;;  %v1009_v35 = vld [vmem:[%s5273_s6 + $0x60] sm:$0xff] (!%p578_p12)  ;;  %s5316_s27 = sadd.s32 (!%p578_p12), 4294967295, %s3975_s21  }
  0x32   : > { %v641_v5 = vld [vmem:[%s5312_s22] sm:$0xff]  ;;  %3649 = vmatpush3.bf16.msk.msra.mxu1 %vm3645_vm3, %v3644_v10  ;;  %v642_v13 = vld [vmem:[%s5312_s22 + $0x8] sm:$0xff]  ;;  %v643_v14 = vld [vmem:[%s5312_s22 + $0x10] sm:$0xff]  ;;  %s3202_s26 = sshll.u32 %s5316_s27, 7  ;;  %s3917_s27 = sshll.u32 %s3980_s1, 4  ;;  %s3918_s27 = int_to_ptr.vmem [resolvable:$false] %s3917_s27 }
  0x33   : > { %3421 = vmatprep.mubr.msk.f32.mxu1 %vm669_vm1, %v641_v5  ;;  %v788_v11 = vld [vmem:[%s5313_s4 + $0x8] sm:$0xff]  ;;  %v787_v12 = vld [vmem:[%s5313_s4] sm:$0xff]  ;;  %v790_v15 = vld [vmem:[%s5313_s4 + $0x18] sm:$0xff]  ;;  %s5221_s20 = scalar_lea.hbm %s5286_s19, %s3202_s26  ;;  %p3920_p2 = scmp.lt.s32.totalorder %s5216_s28, %s3918_s27 }
  0x34   : > { %v789_v16 = vld [vmem:[%s5313_s4 + $0x10] sm:$0xff]  ;;  %v644_v17 = vld [vmem:[%s5312_s22 + $0x18] sm:$0xff]  ;;  %v792_v18 = vld [vmem:[%s5313_s4 + $0x28] sm:$0xff]  ;;  %s5314_s22 = sld [smem:[#allocation13_spill]] }
  0x35   : > { %666 = vperm.xlu1 %3888, %v648_v6   ;;  %656 = vperm.xlu0 %3887, %v646_v7   ;;  %v791_v19 = vld [vmem:[%s5313_s4 + $0x20] sm:$0xff]  ;;  %v794_v20 = vld [vmem:[%s5313_s4 + $0x38] sm:$0xff]  ;;  %v793_v21 = vld [vmem:[%s5313_s4 + $0x30] sm:$0xff]  ;;  %s3913_s4 = scalar_lea.vmem %s5216_s28, 256 }
  0x36   : > { %3422 = vmatmul.mubr.msk.f32.vlgmr.msra.gmra.mrb[0].mxu1 %vm669_vm1, %v642_v13  ;;  %v1010_v34 = vld [vmem:[%s5273_s6 + $0x68] sm:$0xff]  ;;  %v1012_v36 = vld [vmem:[%s5273_s6 + $0x78] sm:$0xff]  ;;  %v1011_v37 = vld [vmem:[%s5273_s6 + $0x70] sm:$0xff]  ;;  %p3914_p13 = scmp.ne.s32.totalorder %s5216_s28, %s3913_s4 }
  0x37   : > { %3424 = vmatprep.mubr.msk.f32.mxu1 %vm669_vm1, %v643_v14  ;;  %v1352_v38 = vld [vmem:[%s5275_s8 + $0x8] sm:$0xff]  ;;  %v1351_v39 = vld [vmem:[%s5275_s8] sm:$0xff]  ;;  %v1354_v40 = vld [vmem:[%s5275_s8 + $0x18] sm:$0xff] }
  0x38   : > { %v1353_v41 = vld [vmem:[%s5275_s8 + $0x10] sm:$0xff]  ;;  %v1356_v42 = vld [vmem:[%s5275_s8 + $0x28] sm:$0xff]  ;;  %v1355_v43 = vld [vmem:[%s5275_s8 + $0x20] sm:$0xff]  ;;  %p3915_p0 = pnand %p3914_p13, %p4122_p6 }
  0x39   : > { %802 = vperm.xlu1 %3888, %v788_v11   ;;  %797 = vperm.xlu0 %3887, %v787_v12   ;;  %v1358_v44 = vld [vmem:[%s5275_s8 + $0x38] sm:$0xff]  ;;  %v1357_v45 = vld [vmem:[%s5275_s8 + $0x30] sm:$0xff]  ;;  %v1360_v46 = vld [vmem:[%s5275_s8 + $0x48] sm:$0xff] }
  0x3a   : > { %3425 = vmatmul.mubr.msk.f32.gmra.mrb[2].mxu1 %vm669_vm1, %v644_v17  ;;  %v1359_v47 = vld [vmem:[%s5275_s8 + $0x40] sm:$0xff]  ;;  %v1362_v48 = vld [vmem:[%s5275_s8 + $0x58] sm:$0xff]  ;;  %v1361_v49 = vld [vmem:[%s5275_s8 + $0x50] sm:$0xff]  ;;  %p3916_p1 = pneg %p3915_p0 }
  0x3b   : > { %v1364_v50 = vld [vmem:[%s5275_s8 + $0x68] sm:$0xff]  ;;  %v1363_v51 = vld [vmem:[%s5275_s8 + $0x60] sm:$0xff]  ;;  %v1366_v52 = vld [vmem:[%s5275_s8 + $0x78] sm:$0xff] }
  0x3c   : > { %v1365_v53 = vld [vmem:[%s5275_s8 + $0x70] sm:$0xff]  ;;  %v1368_v54 = vld [vmem:[%s5275_s8 + $0x88] sm:$0xff]  ;;  %v1367_v55 = vld [vmem:[%s5275_s8 + $0x80] sm:$0xff] }
  0x3d   : > { %812 = vperm.xlu1 %3888, %v790_v15   ;;  %807 = vperm.xlu0 %3887, %v789_v16   ;;  %v1370_v56 = vld [vmem:[%s5275_s8 + $0x98] sm:$0xff]  ;;  %v1369_v57 = vld [vmem:[%s5275_s8 + $0x90] sm:$0xff]  ;;  %v1372_v58 = vld [vmem:[%s5275_s8 + $0xa8] sm:$0xff] }
  0x3e   : > { %v1371_v59 = vld [vmem:[%s5275_s8 + $0xa0] sm:$0xff]  ;;  %v1374_v60 = vld [vmem:[%s5275_s8 + $0xb8] sm:$0xff]  ;;  %v1373_v61 = vld [vmem:[%s5275_s8 + $0xb0] sm:$0xff] }
  0x3f   : > { %v1376_v62 = vld [vmem:[%s5275_s8 + $0xc8] sm:$0xff]  ;;  %v1375_v63 = vld [vmem:[%s5275_s8 + $0xc0] sm:$0xff]  ;;  %v1378_v0 = vld [vmem:[%s5275_s8 + $0xd8] sm:$0xff] }
  0x40   : > { %v1377_v1 = vld [vmem:[%s5275_s8 + $0xd0] sm:$0xff]  ;;  %v779_v2 = vld [vmem:[%s5314_s22] sm:$0xff]  ;;  %v1380_v3 = vld [vmem:[%s5275_s8 + $0xe8] sm:$0xff] }
  0x41   : > { %822 = vperm.xlu1 %3888, %v792_v18   ;;  %817 = vperm.xlu0 %3887, %v791_v19   ;;  %v1379_v4 = vld [vmem:[%s5275_s8 + $0xe0] sm:$0xff]  ;;  %v1382_v5 = vld [vmem:[%s5275_s8 + $0xf8] sm:$0xff]  ;;  %v1381_v6 = vld [vmem:[%s5275_s8 + $0xf0] sm:$0xff] }
  0x42   : > { %3435 = vmatprep.mubr.msk.f32.mxu1 %vm835_vm4, %v779_v2  ;;  %v1913_v7 = vld [vmem:[%s5277_s10 + $0x88] sm:$0xff]  ;;  %v1912_v8 = vld [vmem:[%s5277_s10 + $0x80] sm:$0xff]  ;;  %v1915_v11 = vld [vmem:[%s5277_s10 + $0x98] sm:$0xff] }
  0x43   : > { %v1897_v9 = vld [vmem:[%s5277_s10 + $0x8] sm:$0xff]  ;;  %v1896_v10 = vld [vmem:[%s5277_s10] sm:$0xff]  ;;  %v1914_v12 = vld [vmem:[%s5277_s10 + $0x90] sm:$0xff] }
  0x44   : > { %v1899_v13 = vld [vmem:[%s5277_s10 + $0x18] sm:$0xff]  ;;  %v1898_v14 = vld [vmem:[%s5277_s10 + $0x10] sm:$0xff]  ;;  %v1917_v15 = vld [vmem:[%s5277_s10 + $0xa8] sm:$0xff] }
  0x45   : > { %832 = vperm.xlu1 %3888, %v794_v20   ;;  %827 = vperm.xlu0 %3887, %v793_v21   ;;  %v1916_v16 = vld [vmem:[%s5277_s10 + $0xa0] sm:$0xff]  ;;  %v1901_v17 = vld [vmem:[%s5277_s10 + $0x28] sm:$0xff]  ;;  %v1919_v19 = vld [vmem:[%s5277_s10 + $0xb8] sm:$0xff] }
  0x46   : > { %v1900_v18 = vld [vmem:[%s5277_s10 + $0x20] sm:$0xff]  ;;  %v1918_v20 = vld [vmem:[%s5277_s10 + $0xb0] sm:$0xff]  ;;  %v1903_v21 = vld [vmem:[%s5277_s10 + $0x38] sm:$0xff] }
  0x47   : > { %v2423_v2 = vld [vmem:[%s5279_s12 + $0x70] sm:$0xff] }
  0x49   : > { %1020 = vperm.xlu1 %3888, %v998_v22   ;;  %1015 = vperm.xlu0 %3887, %v997_v23   ;;  %v1902_v22 = vld [vmem:[%s5277_s10 + $0x30] sm:$0xff]  ;;  %v1921_v23 = vld [vmem:[%s5277_s10 + $0xc8] sm:$0xff] }
  0x4d   : > { %1030 = vperm.xlu1 %3888, %v1000_v24   ;;  %1025 = vperm.xlu0 %3887, %v999_v25   ;;  %v1920_v24 = vld [vmem:[%s5277_s10 + $0xc0] sm:$0xff]  ;;  %v1905_v25 = vld [vmem:[%s5277_s10 + $0x48] sm:$0xff] }
  0x51   : > { %1040 = vperm.xlu1 %3888, %v1002_v26   ;;  %1035 = vperm.xlu0 %3887, %v1001_v27   ;;  %v1904_v26 = vld [vmem:[%s5277_s10 + $0x40] sm:$0xff]  ;;  %v1923_v27 = vld [vmem:[%s5277_s10 + $0xd8] sm:$0xff] }
  0x55   : > { %1050 = vperm.xlu1 %3888, %v1004_v28   ;;  %1045 = vperm.xlu0 %3887, %v1003_v29   ;;  %v1922_v28 = vld [vmem:[%s5277_s10 + $0xd0] sm:$0xff]  ;;  %v1907_v29 = vld [vmem:[%s5277_s10 + $0x58] sm:$0xff] }
  0x59   : > { %1060 = vperm.xlu1 %3888, %v1006_v30   ;;  %1055 = vperm.xlu0 %3887, %v1005_v31   ;;  %v1906_v30 = vld [vmem:[%s5277_s10 + $0x50] sm:$0xff]  ;;  %v1925_v31 = vld [vmem:[%s5277_s10 + $0xe8] sm:$0xff] }
  0x5d   : > { %1070 = vperm.xlu1 %3888, %v1008_v32   ;;  %1065 = vperm.xlu0 %3887, %v1007_v33   ;;  %v1924_v32 = vld [vmem:[%s5277_s10 + $0xe0] sm:$0xff]  ;;  %v1909_v33 = vld [vmem:[%s5277_s10 + $0x68] sm:$0xff] }
  0x61   : > { %1080 = vperm.xlu1 %3888, %v1010_v34   ;;  %1075 = vperm.xlu0 %3887, %v1009_v35   ;;  %v1908_v34 = vld [vmem:[%s5277_s10 + $0x60] sm:$0xff]  ;;  %v1927_v35 = vld [vmem:[%s5277_s10 + $0xf8] sm:$0xff] }
  0x65   : > { %1090 = vperm.xlu1 %3888, %v1012_v36   ;;  %1085 = vperm.xlu0 %3887, %v1011_v37   ;;  %v1926_v36 = vld [vmem:[%s5277_s10 + $0xf0] sm:$0xff] }
  0x69   : > { %1390 = vperm.xlu1 %3888, %v1352_v38   ;;  %1385 = vperm.xlu0 %3887, %v1351_v39   ;;  %v1911_v39 = vld [vmem:[%s5277_s10 + $0x78] sm:$0xff] }
  0x6d   : > { %1400 = vperm.xlu1 %3888, %v1354_v40   ;;  %1395 = vperm.xlu0 %3887, %v1353_v41   ;;  %v1910_v40 = vld [vmem:[%s5277_s10 + $0x70] sm:$0xff] }
  0x71   : > { %1410 = vperm.xlu1 %3888, %v1356_v42   ;;  %1405 = vperm.xlu0 %3887, %v1355_v43   ;;  %v2410_v43 = vld [vmem:[%s5279_s12 + $0x8] sm:$0xff] }
  0x75   : > { %1420 = vperm.xlu1 %3888, %v1358_v44   ;;  %1415 = vperm.xlu0 %3887, %v1357_v45   ;;  %v2409_v44 = vld [vmem:[%s5279_s12] sm:$0xff]  ;;  %v2412_v45 = vld [vmem:[%s5279_s12 + $0x18] sm:$0xff] }
  0x79   : > { %1430 = vperm.xlu1 %3888, %v1360_v46   ;;  %1425 = vperm.xlu0 %3887, %v1359_v47   ;;  %v2411_v46 = vld [vmem:[%s5279_s12 + $0x10] sm:$0xff] }
  0x7d   : > { %1440 = vperm.xlu1 %3888, %v1362_v48   ;;  %1435 = vperm.xlu0 %3887, %v1361_v49   ;;  %v2414_v49 = vld [vmem:[%s5279_s12 + $0x28] sm:$0xff] }
  0x81   : > { %1450 = vperm.xlu1 %3888, %v1364_v50   ;;  %1445 = vperm.xlu0 %3887, %v1363_v51   ;;  %v2413_v50 = vld [vmem:[%s5279_s12 + $0x20] sm:$0xff] }
  0x85   : > { %1460 = vperm.xlu1 %3888, %v1366_v52   ;;  %1455 = vperm.xlu0 %3887, %v1365_v53   ;;  %v2416_v53 = vld [vmem:[%s5279_s12 + $0x38] sm:$0xff] }
  0x89   : > { %1470 = vperm.xlu1 %3888, %v1368_v54   ;;  %1465 = vperm.xlu0 %3887, %v1367_v55   ;;  %v2415_v54 = vld [vmem:[%s5279_s12 + $0x30] sm:$0xff]  ;;  %v2418_v55 = vld [vmem:[%s5279_s12 + $0x48] sm:$0xff] }
  0x8d   : > { %1480 = vperm.xlu1 %3888, %v1370_v56   ;;  %1475 = vperm.xlu0 %3887, %v1369_v57   ;;  %v2417_v56 = vld [vmem:[%s5279_s12 + $0x40] sm:$0xff] }
  0x91   : > { %1490 = vperm.xlu1 %3888, %v1372_v58   ;;  %1485 = vperm.xlu0 %3887, %v1371_v59   ;;  %v2420_v59 = vld [vmem:[%s5279_s12 + $0x58] sm:$0xff] }
  0x95   : > { %1500 = vperm.xlu1 %3888, %v1374_v60   ;;  %1495 = vperm.xlu0 %3887, %v1373_v61   ;;  %v2419_v60 = vld [vmem:[%s5279_s12 + $0x50] sm:$0xff] }
  0x99   : > { %1510 = vperm.xlu1 %3888, %v1376_v62   ;;  %1505 = vperm.xlu0 %3887, %v1375_v63   ;;  %v2422_v63 = vld [vmem:[%s5279_s12 + $0x68] sm:$0xff] }
  0x9d   : > { %1520 = vperm.xlu1 %3888, %v1378_v0   ;;  %1515 = vperm.xlu0 %3887, %v1377_v1   ;;  %v2421_v0 = vld [vmem:[%s5279_s12 + $0x60] sm:$0xff]  ;;  %v2424_v1 = vld [vmem:[%s5279_s12 + $0x78] sm:$0xff] }
  0xa1   : > { %1530 = vperm.xlu1 %3888, %v1380_v3   ;;  %1525 = vperm.xlu0 %3887, %v1379_v4  }
  0xa5   : > { %1540 = vperm.xlu1 %3888, %v1382_v5   ;;  %1535 = vperm.xlu0 %3887, %v1381_v6   ;;  %v2691_v5 = vld [vmem:[%s5281_s14 + $0x8] sm:$0xff]  ;;  %v2690_v6 = vld [vmem:[%s5281_s14] sm:$0xff] }
  0xa9   : > { %2015 = vperm.xlu1 %3888, %v1913_v7   ;;  %2010 = vperm.xlu0 %3887, %v1912_v8  }
  0xad   : > { %1935 = vperm.xlu1 %3888, %v1897_v9   ;;  %1930 = vperm.xlu0 %3887, %v1896_v10   ;;  %v2693_v9 = vld [vmem:[%s5281_s14 + $0x18] sm:$0xff]  ;;  %v2692_v10 = vld [vmem:[%s5281_s14 + $0x10] sm:$0xff] }
  0xb0   : > { %v4436_v37 = vpop.permute.xlu1 %661  ;;  %v4438_v38 = vpop.permute.xlu0 %651 }
  0xb1   : > { %2025 = vperm.xlu1 %3888, %v1915_v11   ;;  %2020 = vperm.xlu0 %3887, %v1914_v12  }
  0xb4   : > { %v4446_v41 = vpop.permute.xlu1 %666  ;;  %v657_v42 = vpop.permute.xlu0 %656 }
  0xb5   : > { %1945 = vperm.xlu1 %3888, %v1899_v13   ;;  %1940 = vperm.xlu0 %3887, %v1898_v14   ;;  %v2695_v14 = vld [vmem:[%s5281_s14 + $0x28] sm:$0xff] }
  0xb8   : > { %v4460_v47 = vpop.permute.xlu1 %802  ;;  %v4462_v48 = vpop.permute.xlu0 %797 }
  0xb9   : > { %2035 = vperm.xlu1 %3888, %v1917_v15   ;;  %2030 = vperm.xlu0 %3887, %v1916_v16   ;;  %v2694_v15 = vld [vmem:[%s5281_s14 + $0x20] sm:$0xff] }
  0xbc   : > { %v4470_v51 = vpop.permute.xlu1 %812  ;;  %v4472_v52 = vpop.permute.xlu0 %807 }
  0xbd   : > { %1955 = vperm.xlu1 %3888, %v1901_v17   ;;  %1950 = vperm.xlu0 %3887, %v1900_v18  }
  0xc0   : > { %v4486_v57 = vpop.permute.xlu1 %822  ;;  %v4488_v58 = vpop.permute.xlu0 %817 }
  0xc1   : > { %2045 = vperm.xlu1 %3888, %v1919_v19   ;;  %2040 = vperm.xlu0 %3887, %v1918_v20  }
  0xc4   : > { %v4496_v61 = vpop.permute.xlu1 %832  ;;  %v4498_v62 = vpop.permute.xlu0 %827 }
  0xc5   : > { %1965 = vperm.xlu1 %3888, %v1903_v21   ;;  %1960 = vperm.xlu0 %3887, %v1902_v22  }
  0xc8   : > { %v4512_v3 = vpop.permute.xlu1 %1020  ;;  %v4514_v4 = vpop.permute.xlu0 %1015 }
  0xc9   : > { %2055 = vperm.xlu1 %3888, %v1921_v23   ;;  %2050 = vperm.xlu0 %3887, %v1920_v24  }
  0xcc   : > { %v4522_v7 = vpop.permute.xlu1 %1030  ;;  %v4524_v8 = vpop.permute.xlu0 %1025 }
  0xcd   : > { %1975 = vperm.xlu1 %3888, %v1905_v25   ;;  %1970 = vperm.xlu0 %3887, %v1904_v26   ;;  %v2697_v25 = vld [vmem:[%s5281_s14 + $0x38] sm:$0xff]  ;;  %v2696_v26 = vld [vmem:[%s5281_s14 + $0x30] sm:$0xff] }
  0xd0   : > { %v4538_v16 = vpop.permute.xlu1 %1040  ;;  %v4540_v17 = vpop.permute.xlu0 %1035 }
  0xd1   : > { %2065 = vperm.xlu1 %3888, %v1923_v27   ;;  %2060 = vperm.xlu0 %3887, %v1922_v28  }
  0xd5   : > { %1985 = vperm.xlu1 %3888, %v1907_v29   ;;  %1980 = vperm.xlu0 %3887, %v1906_v30   ;;  %v4551_v30 = vpop.permute.xlu1 %1050 }
  0xd9   : > { %2075 = vperm.xlu1 %3888, %v1925_v31   ;;  %2070 = vperm.xlu0 %3887, %v1924_v32   ;;  %v4553_v31 = vpop.permute.xlu0 %1045 }
  0xdd   : > { %1995 = vperm.xlu1 %3888, %v1909_v33   ;;  %1990 = vperm.xlu0 %3887, %v1908_v34  }
  0xe1   : > { %2085 = vperm.xlu1 %3888, %v1927_v35   ;;  %2080 = vperm.xlu0 %3887, %v1926_v36   ;;  %v2856_v35 = vld [vmem:[%s5283_s16 + $0x8] sm:$0xff]  ;;  %v2855_v36 = vld [vmem:[%s5283_s16] sm:$0xff] }
  0xe5   : > { %2005 = vperm.xlu1 %3888, %v1911_v39   ;;  %2000 = vperm.xlu0 %3887, %v1910_v40   ;;  %v2858_v39 = vld [vmem:[%s5283_s16 + $0x18] sm:$0xff]  ;;  %v2857_v40 = vld [vmem:[%s5283_s16 + $0x10] sm:$0xff] }
  0xe9   : > { %2432 = vperm.xlu1 %3888, %v2410_v43   ;;  %2427 = vperm.xlu0 %3887, %v2409_v44   ;;  %v780_v43 = vld [vmem:[%s5314_s22 + $0x8] sm:$0xff]  ;;  %v781_v44 = vld [vmem:[%s5314_s22 + $0x10] sm:$0xff] }
  0xed   : > { %2442 = vperm.xlu1 %3888, %v2412_v45   ;;  %2437 = vperm.xlu0 %3887, %v2411_v46   ;;  %v2983_v45 = vld [vmem:[%s5285_s18 + $0x8] sm:$0x1]  ;;  %v2982_v46 = vld [vmem:[%s5285_s18] sm:$0xff] }
  0xf1   : > { %2452 = vperm.xlu1 %3888, %v2414_v49   ;;  %2447 = vperm.xlu0 %3887, %v2413_v50   ;;  %v782_v49 = vld [vmem:[%s5314_s22 + $0x18] sm:$0xff] }
  0xf5   : > { %2462 = vperm.xlu1 %3888, %v2416_v53   ;;  %2457 = vperm.xlu0 %3887, %v2415_v54   ;;  %v783_v54 = vld [vmem:[%s5314_s22 + $0x20] sm:$0xff] }
  0xf9   : > { %2472 = vperm.xlu1 %3888, %v2418_v55   ;;  %2467 = vperm.xlu0 %3887, %v2417_v56   ;;  %v784_v55 = vld [vmem:[%s5314_s22 + $0x28] sm:$0xff]  ;;  %v785_v56 = vld [vmem:[%s5314_s22 + $0x30] sm:$0xff] }
  0xfd   : > { %2482 = vperm.xlu1 %3888, %v2420_v59   ;;  %2477 = vperm.xlu0 %3887, %v2419_v60   ;;  %v786_v59 = vld [vmem:[%s5314_s22 + $0x38] sm:$0xff]  ;;  %v981_v60 = vld [vmem:[%s5315_s5] sm:$0xff] }
  0xfe   : > { %3463 = vmatprep.mubr.msk.f32.mxu0 %vm1093_vm5, %v981_v60  ;;  %v1319_v60 = vld [vmem:[%s5274_s7] sm:$0xff] }
 0x101   : > { %2492 = vperm.xlu1 %3888, %v2422_v63   ;;  %2487 = vperm.xlu0 %3887, %v2421_v0  }
 0x105   : > { %2502 = vperm.xlu1 %3888, %v2424_v1   ;;  %2497 = vperm.xlu0 %3887, %v2423_v2  }
 0x109   : > { %2705 = vperm.xlu1 %3888, %v2691_v5   ;;  %2700 = vperm.xlu0 %3887, %v2690_v6   ;;  %v3423_v11 = vpop.f32.mrb[0].mxu1 }
 0x10a   : > { %v758_v12 = vadd.f32 %v3423_v11, %v657_v42  ;;  %v752_v13 = vpop.f32.mrb[1].mxu1  ;;  %v4569_v42 = vpop.permute.xlu0 %1055 }
 0x10b   : > { %v753_v18 = vadd.f32 %v752_v13, %v4438_v38 }
 0x10c   : > { %v772_v19 = vmul.f32 0.01, %v758_v12 }
 0x10d   : > { %2715 = vperm.xlu1 %3888, %v2693_v9   ;;  %2710 = vperm.xlu0 %3887, %v2692_v10   ;;  %v771_v20 = vmul.f32 0.01, %v753_v18  ;;  %v3426_v21 = vpop.f32.mrb[2].mxu1 }
 0x10e   : > { %v776_v22 = vmax.f32 %v758_v12, %v772_v19  ;;  %v768_v23 = vadd.f32 %v3426_v21, %v4446_v41  ;;  %v762_v24 = vpop.f32.mrb[3].mxu1  ;;  %v4567_v41 = vpop.permute.xlu1 %1060 }
 0x10f   : > { %v775_v27 = vmax.f32 %v753_v18, %v771_v20  ;;  %v763_v28 = vadd.f32 %v762_v24, %v4436_v37  ;;  %v4590_v53 = vpop.permute.xlu0 %1065 }
 0x110   : > { %v774_v29 = vmul.f32 0.01, %v768_v23 }
 0x111   : > { %2725 = vperm.xlu1 %3888, %v2695_v14   ;;  %2720 = vperm.xlu0 %3887, %v2694_v15   ;;  %v773_v32 = vmul.f32 0.01, %v763_v28  ;;  %v3650_v33 = vpack.c.bf16 %v776_v22, %v775_v27 }
 0x112   : > { %v778_v34 = vmax.f32 %v768_v23, %v774_v29  ;;  %v4588_v50 = vpop.permute.xlu1 %1070 }
 0x113   : > { %v777_v38 = vmax.f32 %v763_v28, %v773_v32  ;;  %3651 = vmatprep.subr.bf16.mxu1 %v3650_v33 }
 0x114   : > { %3653 = vmatpush3.bf16.msra.mxu1 %v3650_v33 }
 0x115   : > { %2735 = vperm.xlu1 %3888, %v2697_v25   ;;  %2730 = vperm.xlu0 %3887, %v2696_v26   ;;  %v3654_v37 = vpack.c.bf16 %v778_v34, %v777_v38  ;;  %v984_v38 = vld [vmem:[%s5315_s5 + $0x18] sm:$0xff] }
 0x117   : > { %3655 = vmatprep.subr.bf16.mxu1 %v3654_v37 }
 0x118   : > { %3657 = vmatpush3.bf16.msra.mxu1 %v3654_v37  ;;  %v985_v37 = vld [vmem:[%s5315_s5 + $0x20] sm:$0xff] }
 0x119   : > { %2866 = vperm.xlu1 %3888, %v2856_v35   ;;  %2861 = vperm.xlu0 %3887, %v2855_v36  }
 0x11b   : > { %3436 = vmatmul.mubr.msk.f32.vlgmr.msra.gmra.mrb[4].mxu1 %vm835_vm4, %v780_v43  ;;  %v988_v43 = vld [vmem:[%s5315_s5 + $0x38] sm:$0xff] }
 0x11c   : > { %3438 = vmatprep.mubr.msk.f32.mxu1 %vm835_vm4, %v781_v44  ;;  %v989_v44 = vld [vmem:[%s5315_s5 + $0x40] sm:$0xff] }
 0x11d   : > { %2876 = vperm.xlu1 %3888, %v2858_v39   ;;  %2871 = vperm.xlu0 %3887, %v2857_v40   ;;  %v986_v39 = vld [vmem:[%s5315_s5 + $0x28] sm:$0xff]  ;;  %v987_v40 = vld [vmem:[%s5315_s5 + $0x30] sm:$0xff] }
 0x11f   : > { %3439 = vmatmul.mubr.msk.f32.gmra.mrb[6].mxu1 %vm835_vm4, %v782_v49  ;;  %v992_v49 = vld [vmem:[%s5315_s5 + $0x58] sm:$0xff] }
 0x120   : > { %3441 = vmatprep.mubr.msk.f32.mxu1 %vm835_vm4, %v783_v54  ;;  %v993_v54 = vld [vmem:[%s5315_s5 + $0x60] sm:$0xff] }
 0x121   : > { %2991 = vperm.xlu1 %3888, %v2983_v45   ;;  %2986 = vperm.xlu0 %3887, %v2982_v46   ;;  %v990_v45 = vld [vmem:[%s5315_s5 + $0x48] sm:$0xff]  ;;  %v991_v46 = vld [vmem:[%s5315_s5 + $0x50] sm:$0xff] }
 0x123   : > { %3442 = vmatmul.mubr.msk.f32.gmra.mrb[8].mxu1 %vm835_vm4, %v784_v55  ;;  %v994_v55 = vld [vmem:[%s5315_s5 + $0x68] sm:$0xff] }
 0x124   : > { %3444 = vmatprep.mubr.msk.f32.mxu1 %vm835_vm4, %v785_v56  ;;  %v995_v56 = vld [vmem:[%s5315_s5 + $0x70] sm:$0xff] }
 0x127   : > { %3445 = vmatmul.mubr.msk.f32.gmra.mrb[10].mxu1 %vm835_vm4, %v786_v59  ;;  %v996_v59 = vld [vmem:[%s5315_s5 + $0x78] sm:$0xff] }
 0x128   : > { %3519 = vmatprep.mubr.f32.mxu1 %v1319_v60 }
 0x1ee   : > { %v3437_v63 = vpop.f32.mrb[4].mxu1 }
 0x1ef   : > { %v932_v0 = vadd.f32 %v3437_v63, %v4460_v47  ;;  %v926_v1 = vpop.f32.mrb[5].mxu1 }
 0x1f0   : > { %v927_v2 = vadd.f32 %v926_v1, %v4462_v48 }
 0x1f1   : > { %v966_v5 = vmul.f32 0.01, %v932_v0 }
 0x1f2   : > { %v965_v6 = vmul.f32 0.01, %v927_v2  ;;  %v3440_v9 = vpop.f32.mrb[6].mxu1 }
 0x1f3   : > { %v974_v10 = vmax.f32 %v932_v0, %v966_v5  ;;  %v942_v11 = vadd.f32 %v3440_v9, %v4470_v51  ;;  %v936_v12 = vpop.f32.mrb[7].mxu1 }
 0x1f4   : > { %v973_v13 = vmax.f32 %v927_v2, %v965_v6  ;;  %v937_v14 = vadd.f32 %v936_v12, %v4472_v52 }
 0x1f5   : > { %v968_v15 = vmul.f32 0.01, %v942_v11 }
 0x1f6   : > { %v967_v18 = vmul.f32 0.01, %v937_v14  ;;  %v3443_v19 = vpop.f32.mrb[8].mxu1  ;;  %v3658_v20 = vpack.c.bf16 %v974_v10, %v973_v13 }
 0x1f7   : > { %v976_v21 = vmax.f32 %v942_v11, %v968_v15  ;;  %v952_v47 = vadd.f32 %v3443_v19, %v4486_v57  ;;  %v946_v22 = vpop.f32.mrb[9].mxu1 }
 0x1f8   : > { %v975_v23 = vmax.f32 %v937_v14, %v967_v18  ;;  %v947_v48 = vadd.f32 %v946_v22, %v4488_v58  ;;  %3659 = vmatprep.subr.bf16.mxu0 %v3658_v20 }
 0x1f9   : > { %v970_v24 = vmul.f32 0.01, %v952_v47  ;;  %3661 = vmatpush3.bf16.msra.mxu0 %v3658_v20 }
 0x1fa   : > { %v969_v25 = vmul.f32 0.01, %v947_v48  ;;  %v3446_v51 = vpop.f32.mrb[10].mxu1  ;;  %v3662_v26 = vpack.c.bf16 %v976_v21, %v975_v23 }
 0x1fb   : > { %v978_v27 = vmax.f32 %v952_v47, %v970_v24  ;;  %v962_v52 = vadd.f32 %v3446_v51, %v4496_v61  ;;  %v956_v28 = vpop.f32.mrb[11].mxu1  ;;  %v982_v61 = vld [vmem:[%s5315_s5 + $0x8] sm:$0xff] }
 0x1fc   : > { %v977_v29 = vmax.f32 %v947_v48, %v969_v25  ;;  %v957_v32 = vadd.f32 %v956_v28, %v4498_v62  ;;  %3663 = vmatprep.subr.bf16.mxu0 %v3662_v26  ;;  %v983_v62 = vld [vmem:[%s5315_s5 + $0x10] sm:$0xff]  ;;  %s3919_s5 = scalar_lea.vmem %s3918_s27, 512 }
 0x1fd   : > { %v972_v33 = vmul.f32 0.01, %v962_v52  ;;  %3665 = vmatpush3.bf16.msra.mxu0 %v3662_v26  ;;  %p3921_p3 = scmp.lt.s32.totalorder %s3919_s5, %s3913_s4 }
 0x1fe   : > { %v971_v57 = vmul.f32 0.01, %v957_v32  ;;  %v3666_v34 = vpack.c.bf16 %v978_v27, %v977_v29 }
 0x1ff   : > { %v980_v35 = vmax.f32 %v962_v52, %v972_v33  ;;  %p3922_p4 = por %p3921_p3, %p3920_p2 }
 0x200   : > { %v979_v58 = vmax.f32 %v957_v32, %v971_v57  ;;  %3667 = vmatprep.subr.bf16.mxu0 %v3666_v34 }
 0x201   : > { %3669 = vmatpush3.bf16.msra.mxu0 %v3666_v34  ;;  %p3923_p5 = pnand %p3922_p4, %p3916_p1 }
 0x202   : > { %v3670_v36 = vpack.c.bf16 %v980_v35, %v979_v58 }
 0x204   : > { %3671 = vmatprep.subr.bf16.mxu0 %v3670_v36 }
 0x205   : > { %3673 = vmatpush3.bf16.msra.mxu0 %v3670_v36 }
 0x208   : > { %3464 = vmatmul.mubr.msk.f32.vlgmr.msra.gmra.mrb[0].mxu0 %vm1093_vm5, %v982_v61 }
 0x209   : > { %3466 = vmatprep.mubr.msk.f32.mxu0 %vm1093_vm5, %v983_v62 }
 0x20c   : > { %3467 = vmatmul.mubr.msk.f32.gmra.mrb[2].mxu0 %vm1093_vm5, %v984_v38  ;;  %v1081_v38 = vpop.permute.xlu1 %1080 }
 0x20d   : > { %3469 = vmatprep.mubr.msk.f32.mxu0 %vm1093_vm5, %v985_v37 }
 0x210   : > { %3470 = vmatmul.mubr.msk.f32.gmra.mrb[4].mxu0 %vm1093_vm5, %v986_v39 }
 0x211   : > { %3472 = vmatprep.mubr.msk.f32.mxu0 %vm1093_vm5, %v987_v40 }
 0x214   : > { %3473 = vmatmul.mubr.msk.f32.gmra.mrb[6].mxu0 %vm1093_vm5, %v988_v43 }
 0x215   : > { %3475 = vmatprep.mubr.msk.f32.mxu0 %vm1093_vm5, %v989_v44 }
 0x218   : > { %3476 = vmatmul.mubr.msk.f32.gmra.mrb[8].mxu0 %vm1093_vm5, %v990_v45 }
 0x219   : > { %3478 = vmatprep.mubr.msk.f32.mxu0 %vm1093_vm5, %v991_v46 }
 0x21c   : > { %3479 = vmatmul.mubr.msk.f32.gmra.mrb[10].mxu0 %vm1093_vm5, %v992_v49 }
 0x21d   : > { %3481 = vmatprep.mubr.msk.f32.mxu0 %vm1093_vm5, %v993_v54 }
 0x220   : > { %3482 = vmatmul.mubr.msk.f32.gmra.mrb[12].mxu0 %vm1093_vm5, %v994_v55 }
 0x221   : > { %3484 = vmatprep.mubr.msk.f32.mxu0 %vm1093_vm5, %v995_v56 }
 0x224   : > { %3485 = vmatmul.mubr.msk.f32.gmra.mrb[14].mxu0 %vm1093_vm5, %v996_v59 }
 0x2db   : > { %v3465_v63 = vpop.f32.mrb[0].mxu0 }
 0x2dc   : > { %v1214_v0 = vadd.f32 %v3465_v63, %v4512_v3  ;;  %v1208_v1 = vpop.f32.mrb[1].mxu0 }
 0x2dd   : > { %v1209_v2 = vadd.f32 %v1208_v1, %v4514_v4 }
 0x2de   : > { %v1288_v5 = vmul.f32 0.01, %v1214_v0 }
 0x2df   : > { %v1287_v6 = vmul.f32 0.01, %v1209_v2  ;;  %v3468_v9 = vpop.f32.mrb[2].mxu0 }
 0x2e0   : > { %v1304_v10 = vmax.f32 %v1214_v0, %v1288_v5  ;;  %v1224_v11 = vadd.f32 %v3468_v9, %v4522_v7  ;;  %v1218_v12 = vpop.f32.mrb[3].mxu0 }
 0x2e1   : > { %v1303_v13 = vmax.f32 %v1209_v2, %v1287_v6  ;;  %v1219_v14 = vadd.f32 %v1218_v12, %v4524_v8 }
 0x2e2   : > { %v1290_v15 = vmul.f32 0.01, %v1224_v11 }
 0x2e3   : > { %v1289_v18 = vmul.f32 0.01, %v1219_v14  ;;  %v3471_v19 = vpop.f32.mrb[4].mxu0  ;;  %v3674_v20 = vpack.c.bf16 %v1304_v10, %v1303_v13 }
 0x2e4   : > { %v1306_v21 = vmax.f32 %v1224_v11, %v1290_v15  ;;  %v1234_v3 = vadd.f32 %v3471_v19, %v4538_v16  ;;  %v1228_v47 = vpop.f32.mrb[5].mxu0  ;;  %v1320_v15 = vld [vmem:[%s5274_s7 + $0x8] sm:$0xff]  ;;  %v1322_v19 = vld [vmem:[%s5274_s7 + $0x18] sm:$0xff] }
 0x2e5   : > { %v1305_v22 = vmax.f32 %v1219_v14, %v1289_v18  ;;  %v1229_v4 = vadd.f32 %v1228_v47, %v4540_v17  ;;  %3675 = vmatprep.subr.bf16.mxu1 %v3674_v20  ;;  %v1321_v18 = vld [vmem:[%s5274_s7 + $0x10] sm:$0xff]  ;;  %v1326_v47 = vld [vmem:[%s5274_s7 + $0x38] sm:$0xff] }
 0x2e6   : > { %v1292_v23 = vmul.f32 0.01, %v1234_v3  ;;  %3677 = vmatpush3.bf16.msra.mxu1 %v3674_v20  ;;  %v1323_v20 = vld [vmem:[%s5274_s7 + $0x20] sm:$0xff] }
 0x2e7   : > { %v1291_v48 = vmul.f32 0.01, %v1229_v4  ;;  %v3474_v7 = vpop.f32.mrb[6].mxu0  ;;  %v3678_v24 = vpack.c.bf16 %v1306_v21, %v1305_v22  ;;  %v1324_v21 = vld [vmem:[%s5274_s7 + $0x28] sm:$0xff]  ;;  %v1327_v22 = vld [vmem:[%s5274_s7 + $0x40] sm:$0xff] }
 0x2e8   : > { %v1308_v25 = vmax.f32 %v1234_v3, %v1292_v23  ;;  %v1244_v8 = vadd.f32 %v3474_v7, %v4551_v30  ;;  %v1238_v51 = vpop.f32.mrb[7].mxu0  ;;  %v1325_v3 = vld [vmem:[%s5274_s7 + $0x30] sm:$0xff]  ;;  %v1331_v7 = vld [vmem:[%s5274_s7 + $0x60] sm:$0xff] }
 0x2e9   : > { %v1307_v26 = vmax.f32 %v1229_v4, %v1291_v48  ;;  %v1239_v27 = vadd.f32 %v1238_v51, %v4553_v31  ;;  %3679 = vmatprep.subr.bf16.mxu1 %v3678_v24  ;;  %v1328_v4 = vld [vmem:[%s5274_s7 + $0x48] sm:$0xff]  ;;  %v1329_v23 = vld [vmem:[%s5274_s7 + $0x50] sm:$0xff]  ;;  %v1330_v48 = vld [vmem:[%s5274_s7 + $0x58] sm:$0xff] }
 0x2ea   : > { %v1294_v52 = vmul.f32 0.01, %v1244_v8  ;;  %3681 = vmatpush3.bf16.msra.mxu1 %v3678_v24  ;;  %v1332_v24 = vld [vmem:[%s5274_s7 + $0x68] sm:$0xff]  ;;  %v1335_v51 = vld [vmem:[%s5274_s7 + $0x80] sm:$0xff] }
 0x2eb   : > { %v1293_v16 = vmul.f32 0.01, %v1239_v27  ;;  %v3477_v28 = vpop.f32.mrb[8].mxu0  ;;  %v3682_v29 = vpack.c.bf16 %v1308_v25, %v1307_v26  ;;  %v1333_v25 = vld [vmem:[%s5274_s7 + $0x70] sm:$0xff]  ;;  %v1336_v26 = vld [vmem:[%s5274_s7 + $0x88] sm:$0xff] }
 0x2ec   : > { %v1310_v17 = vmax.f32 %v1244_v8, %v1294_v52  ;;  %v1254_v32 = vadd.f32 %v3477_v28, %v4567_v41  ;;  %v1248_v33 = vpop.f32.mrb[9].mxu0  ;;  %v1076_v41 = vpop.permute.xlu0 %1075  ;;  %v1334_v8 = vld [vmem:[%s5274_s7 + $0x78] sm:$0xff]  ;;  %v1340_v28 = vld [vmem:[%s5274_s7 + $0xa8] sm:$0xff] }
 0x2ed   : > { %v1309_v57 = vmax.f32 %v1239_v27, %v1293_v16  ;;  %v1249_v34 = vadd.f32 %v1248_v33, %v4569_v42  ;;  %3683 = vmatprep.subr.bf16.mxu1 %v3682_v29  ;;  %v1337_v27 = vld [vmem:[%s5274_s7 + $0x90] sm:$0xff]  ;;  %v1338_v52 = vld [vmem:[%s5274_s7 + $0x98] sm:$0xff]  ;;  %v1339_v16 = vld [vmem:[%s5274_s7 + $0xa0] sm:$0xff] }
 0x2ee   : > { %v1296_v35 = vmul.f32 0.01, %v1254_v32  ;;  %3685 = vmatpush3.bf16.msra.mxu1 %v3682_v29  ;;  %v1341_v29 = vld [vmem:[%s5274_s7 + $0xb0] sm:$0xff]  ;;  %v1344_v33 = vld [vmem:[%s5274_s7 + $0xc8] sm:$0xff] }
 0x2ef   : > { %v1295_v30 = vmul.f32 0.01, %v1249_v34  ;;  %v3480_v58 = vpop.f32.mrb[10].mxu0  ;;  %v3686_v36 = vpack.c.bf16 %v1310_v17, %v1309_v57  ;;  %v1342_v17 = vld [vmem:[%s5274_s7 + $0xb8] sm:$0xff]  ;;  %v1345_v57 = vld [vmem:[%s5274_s7 + $0xd0] sm:$0xff] }
 0x2f0   : > { %v1312_v31 = vmax.f32 %v1254_v32, %v1296_v35  ;;  %v1264_v61 = vadd.f32 %v3480_v58, %v4588_v50  ;;  %v1258_v62 = vpop.f32.mrb[11].mxu0  ;;  %v1091_v50 = vpop.permute.xlu1 %1090  ;;  %v1343_v32 = vld [vmem:[%s5274_s7 + $0xc0] sm:$0xff]  ;;  %v1349_v58 = vld [vmem:[%s5274_s7 + $0xf0] sm:$0xff] }
 0x2f1   : > { %v1311_v37 = vmax.f32 %v1249_v34, %v1295_v30  ;;  %v1259_v39 = vadd.f32 %v1258_v62, %v4590_v53  ;;  %3687 = vmatprep.subr.bf16.mxu1 %v3686_v36  ;;  %v1086_v53 = vpop.permute.xlu0 %1085  ;;  %v1346_v34 = vld [vmem:[%s5274_s7 + $0xd8] sm:$0xff]  ;;  %v1347_v35 = vld [vmem:[%s5274_s7 + $0xe0] sm:$0xff]  ;;  %v1348_v30 = vld [vmem:[%s5274_s7 + $0xe8] sm:$0xff] }
 0x2f2   : > { %v1298_v40 = vmul.f32 0.01, %v1264_v61  ;;  %3689 = vmatpush3.bf16.msra.mxu1 %v3686_v36  ;;  %v1350_v36 = vld [vmem:[%s5274_s7 + $0xf8] sm:$0xff] }
 0x2f3   : > { %v1297_v43 = vmul.f32 0.01, %v1259_v39  ;;  %v3483_v42 = vpop.f32.mrb[12].mxu0  ;;  %v3690_v44 = vpack.c.bf16 %v1312_v31, %v1311_v37  ;;  %v3979_v31 = vmov 0.0|0.0  }
 0x2f4   : > { %v1314_v45 = vmax.f32 %v1264_v61, %v1298_v40  ;;  %v1274_v46 = vadd.f32 %v3483_v42, %v1081_v38  ;;  %v1268_v49 = vpop.f32.mrb[13].mxu0  ;;  %3706 = vmatprep.subr.bf16.mxu0 %v3979_v31  ;;  %v1833_v61 = vld [vmem:[%s5276_s9 + $0x8] sm:$0xff]  ;;  %v1391_v62 = vpop.permute.xlu1 %1390 }
 0x2f5   : > { %v1313_v54 = vmax.f32 %v1259_v39, %v1297_v43  ;;  %v1269_v55 = vadd.f32 %v1268_v49, %v1076_v41  ;;  %3691 = vmatprep.subr.bf16.mxu1 %v3690_v44  ;;  %2152 = vmatprep.mubr.f32.mxu0 %v1833_v61  ;;  %v1386_v38 = vpop.permute.xlu0 %1385 }
 0x2f6   : > { %v1300_v56 = vmul.f32 0.01, %v1274_v46  ;;  %3693 = vmatpush3.bf16.msra.mxu1 %v3690_v44 }
 0x2f7   : > { %v1299_v59 = vmul.f32 0.01, %v1269_v55  ;;  %v3486_v60 = vpop.f32.mrb[14].mxu0  ;;  %v3694_v63 = vpack.c.bf16 %v1314_v45, %v1313_v54 }
 0x2f8   : > { %v1316_v0 = vmax.f32 %v1274_v46, %v1300_v56  ;;  %v1284_v1 = vadd.f32 %v3486_v60, %v1091_v50  ;;  %v1278_v2 = vpop.f32.mrb[15].mxu0  ;;  %v1401_v37 = vpop.permute.xlu1 %1400 }
 0x2f9   : > { %v1315_v5 = vmax.f32 %v1269_v55, %v1299_v59  ;;  %v1279_v6 = vadd.f32 %v1278_v2, %v1086_v53  ;;  %3695 = vmatprep.subr.bf16.mxu1 %v3694_v63  ;;  %v1396_v39 = vpop.permute.xlu0 %1395 }
 0x2fa   : > { %v1302_v9 = vmul.f32 0.01, %v1284_v1  ;;  %3697 = vmatpush3.bf16.msra.mxu1 %v3694_v63 }
 0x2fb   : > { %v1301_v10 = vmul.f32 0.01, %v1279_v6  ;;  %v3698_v11 = vpack.c.bf16 %v1316_v0, %v1315_v5 }
 0x2fc   : > { %v1318_v12 = vmax.f32 %v1284_v1, %v1302_v9  ;;  %v1411_v41 = vpop.permute.xlu1 %1410 }
 0x2fd   : > { %v1317_v13 = vmax.f32 %v1279_v6, %v1301_v10  ;;  %3699 = vmatprep.subr.bf16.mxu1 %v3698_v11  ;;  %v1406_v40 = vpop.permute.xlu0 %1405 }
 0x2fe   : > { %3701 = vmatpush3.bf16.msra.mxu1 %v3698_v11 }
 0x2ff   : > { %v3702_v14 = vpack.c.bf16 %v1318_v12, %v1317_v13 }
 0x300   : > { %v1421_v43 = vpop.permute.xlu1 %1420 }
 0x301   : > { %3703 = vmatprep.subr.bf16.mxu1 %v3702_v14  ;;  %v1416_v42 = vpop.permute.xlu0 %1415 }
 0x302   : > { %3705 = vmatpush3.bf16.msra.mxu1 %v3702_v14 }
 0x304   : > { %v1431_v44 = vpop.permute.xlu1 %1430 }
 0x305   : > { %3520 = vmatmul.mubr.f32.vlgmr.msra.gmra.mrb[12].mxu1 %v1320_v15  ;;  %v1426_v45 = vpop.permute.xlu0 %1425 }
 0x306   : > { %3522 = vmatprep.mubr.f32.mxu1 %v1321_v18 }
 0x308   : > { %v1441_v46 = vpop.permute.xlu1 %1440 }
 0x309   : > { %3523 = vmatmul.mubr.f32.gmra.mrb[14].mxu1 %v1322_v19  ;;  %v1436_v54 = vpop.permute.xlu0 %1435 }
 0x30a   : > { %3525 = vmatprep.mubr.f32.mxu1 %v1323_v20 }
 0x30c   : > { %v1451_v2 = vpop.permute.xlu1 %1450 }
 0x30d   : > { %3526 = vmatmul.mubr.f32.gmra.mrb[16].mxu1 %v1324_v21  ;;  %v1446_v9 = vpop.permute.xlu0 %1445 }
 0x30e   : > { %3528 = vmatprep.mubr.f32.mxu1 %v1325_v3 }
 0x310   : > { %v1461_v3 = vpop.permute.xlu1 %1460 }
 0x311   : > { %3529 = vmatmul.mubr.f32.gmra.mrb[18].mxu1 %v1326_v47 }
 0x312   : > { %3531 = vmatprep.mubr.f32.mxu1 %v1327_v22 }
 0x315   : > { %3532 = vmatmul.mubr.f32.gmra.mrb[20].mxu1 %v1328_v4 }
 0x316   : > { %3534 = vmatprep.mubr.f32.mxu1 %v1329_v23  ;;  %v1456_v23 = vpop.permute.xlu0 %1455 }
 0x319   : > { %3535 = vmatmul.mubr.f32.gmra.mrb[22].mxu1 %v1330_v48 }
 0x31a   : > { %3537 = vmatprep.mubr.f32.mxu1 %v1331_v7 }
 0x31d   : > { %3538 = vmatmul.mubr.f32.gmra.mrb[24].mxu1 %v1332_v24 }
 0x31e   : > { %3540 = vmatprep.mubr.f32.mxu1 %v1333_v25 }
 0x321   : > { %3541 = vmatmul.mubr.f32.gmra.mrb[26].mxu1 %v1334_v8 }
 0x322   : > { %3543 = vmatprep.mubr.f32.mxu1 %v1335_v51 }
 0x325   : > { %3544 = vmatmul.mubr.f32.gmra.mrb[28].mxu1 %v1336_v26 }
 0x326   : > { %3546 = vmatprep.mubr.f32.mxu1 %v1337_v27 }
 0x329   : > { %3547 = vmatmul.mubr.f32.gmra.mrb[30].mxu1 %v1338_v52 }
 0x32a   : > { %3549 = vmatprep.mubr.f32.mxu1 %v1339_v16 }
 0x32d   : > { %3550 = vmatmul.mubr.f32.gmra.mrb[32].mxu1 %v1340_v28 }
 0x32e   : > { %3552 = vmatprep.mubr.f32.mxu1 %v1341_v29 }
 0x331   : > { %3553 = vmatmul.mubr.f32.gmra.mrb[34].mxu1 %v1342_v17  ;;  %v1471_v17 = vpop.permute.xlu1 %1470 }
 0x332   : > { %3555 = vmatprep.mubr.f32.mxu1 %v1343_v32 }
 0x335   : > { %3556 = vmatmul.mubr.f32.gmra.mrb[36].mxu1 %v1344_v33 }
 0x336   : > { %3558 = vmatprep.mubr.f32.mxu1 %v1345_v57  ;;  %v1466_v57 = vpop.permute.xlu0 %1465 }
 0x339   : > { %3559 = vmatmul.mubr.f32.gmra.mrb[38].mxu1 %v1346_v34 }
 0x33a   : > { %3561 = vmatprep.mubr.f32.mxu1 %v1347_v35 }
 0x33d   : > { %3562 = vmatmul.mubr.f32.gmra.mrb[40].mxu1 %v1348_v30 }
 0x33e   : > { %3564 = vmatprep.mubr.f32.mxu1 %v1349_v58 }
 0x341   : > { %3565 = vmatmul.mubr.f32.gmra.mrb[42].mxu1 %v1350_v36 }
 0x3d8   : > { %v3521_v49 = vpop.f32.mrb[12].mxu1 }
 0x3d9   : > { %v1615_v55 = vadd.f32 %v3521_v49, %v1391_v62  ;;  %v1609_v56 = vpop.f32.mrb[13].mxu1 }
 0x3da   : > { %v1610_v50 = vadd.f32 %v1609_v56, %v1386_v38 }
 0x3db   : > { %v1769_v59 = vmul.f32 0.01, %v1615_v55 }
 0x3dc   : > { %v1768_v60 = vmul.f32 0.01, %v1610_v50  ;;  %v3524_v63 = vpop.f32.mrb[14].mxu1 }
 0x3dd   : > { %v1801_v53 = vmax.f32 %v1615_v55, %v1769_v59  ;;  %v1625_v0 = vadd.f32 %v3524_v63, %v1401_v37  ;;  %v1619_v1 = vpop.f32.mrb[15].mxu1 }
 0x3de   : > { %v1800_v5 = vmax.f32 %v1610_v50, %v1768_v60  ;;  %v1620_v6 = vadd.f32 %v1619_v1, %v1396_v39 }
 0x3df   : > { %v1771_v10 = vmul.f32 0.01, %v1625_v0 }
 0x3e0   : > { %v3707_v11 = vpack.c.bf16 %v1801_v53, %v1800_v5  ;;  %v1770_v12 = vmul.f32 0.01, %v1620_v6  ;;  %v3527_v13 = vpop.f32.mrb[16].mxu1 }
 0x3e1   : > { %v1803_v14 = vmax.f32 %v1625_v0, %v1771_v10  ;;  %v1635_v15 = vadd.f32 %v3527_v13, %v1411_v41  ;;  %v1629_v18 = vpop.f32.mrb[17].mxu1  ;;  %v1481_v41 = vpop.permute.xlu1 %1480 }
 0x3e2   : > { %v1802_v19 = vmax.f32 %v1620_v6, %v1770_v12  ;;  %v1630_v20 = vadd.f32 %v1629_v18, %v1406_v40  ;;  %3708 = vmatpush1.bf16.msra.mxu0 %v3707_v11 }
 0x3e3   : > { %v1773_v21 = vmul.f32 0.01, %v1635_v15  ;;  %3709 = vmatprep.subr.bf16.mxu0 %v3979_v31 }
 0x3e4   : > { %v3710_v47 = vpack.c.bf16 %v1803_v14, %v1802_v19  ;;  %v1772_v22 = vmul.f32 0.01, %v1630_v20  ;;  %v3530_v4 = vpop.f32.mrb[18].mxu1 }
 0x3e5   : > { %v1805_v48 = vmax.f32 %v1635_v15, %v1773_v21  ;;  %v1645_v7 = vadd.f32 %v3530_v4, %v1421_v43  ;;  %v1639_v24 = vpop.f32.mrb[19].mxu1  ;;  %v1491_v1 = vpop.permute.xlu1 %1490 }
 0x3e6   : > { %v1804_v25 = vmax.f32 %v1630_v20, %v1772_v22  ;;  %v1640_v8 = vadd.f32 %v1639_v24, %v1416_v42  ;;  %3711 = vmatpush1.bf16.msra.mxu0 %v3710_v47 }
 0x3e7   : > { %v1775_v51 = vmul.f32 0.01, %v1645_v7  ;;  %3712 = vmatprep.subr.bf16.mxu0 %v3979_v31 }
 0x3e8   : > { %v3713_v26 = vpack.c.bf16 %v1805_v48, %v1804_v25  ;;  %v1774_v27 = vmul.f32 0.01, %v1640_v8  ;;  %v3533_v52 = vpop.f32.mrb[20].mxu1 }
 0x3e9   : > { %v1807_v16 = vmax.f32 %v1645_v7, %v1775_v51  ;;  %v1655_v28 = vadd.f32 %v3533_v52, %v1431_v44  ;;  %v1649_v29 = vpop.f32.mrb[21].mxu1  ;;  %v1476_v44 = vpop.permute.xlu0 %1475 }
 0x3ea   : > { %v1806_v32 = vmax.f32 %v1640_v8, %v1774_v27  ;;  %v1650_v33 = vadd.f32 %v1649_v29, %v1426_v45  ;;  %3714 = vmatpush1.bf16.msra.mxu0 %v3713_v26  ;;  %v1501_v21 = vpop.permute.xlu1 %1500 }
 0x3eb   : > { %v1777_v34 = vmul.f32 0.01, %v1655_v28  ;;  %3715 = vmatprep.subr.bf16.mxu0 %v3979_v31 }
 0x3ec   : > { %v3716_v35 = vpack.c.bf16 %v1807_v16, %v1806_v32  ;;  %v1776_v30 = vmul.f32 0.01, %v1650_v33  ;;  %v3536_v58 = vpop.f32.mrb[22].mxu1 }
 0x3ed   : > { %v1809_v36 = vmax.f32 %v1655_v28, %v1777_v34  ;;  %v1665_v61 = vadd.f32 %v3536_v58, %v1441_v46  ;;  %v1659_v62 = vpop.f32.mrb[23].mxu1  ;;  %v1486_v10 = vpop.permute.xlu0 %1485 }
 0x3ee   : > { %v1808_v38 = vmax.f32 %v1650_v33, %v1776_v30  ;;  %v1660_v37 = vadd.f32 %v1659_v62, %v1436_v54  ;;  %3717 = vmatpush1.bf16.msra.mxu0 %v3716_v35  ;;  %v1511_v29 = vpop.permute.xlu1 %1510 }
 0x3ef   : > { %v1779_v39 = vmul.f32 0.01, %v1665_v61  ;;  %3718 = vmatprep.subr.bf16.mxu0 %v3979_v31 }
 0x3f0   : > { %v3719_v40 = vpack.c.bf16 %v1809_v36, %v1808_v38  ;;  %v1778_v43 = vmul.f32 0.01, %v1660_v37  ;;  %v3539_v42 = vpop.f32.mrb[24].mxu1 }
 0x3f1   : > { %v1811_v45 = vmax.f32 %v1665_v61, %v1779_v39  ;;  %v1675_v49 = vadd.f32 %v3539_v42, %v1451_v2  ;;  %v1669_v55 = vpop.f32.mrb[25].mxu1  ;;  %v1496_v4 = vpop.permute.xlu0 %1495 }
 0x3f2   : > { %v1810_v56 = vmax.f32 %v1660_v37, %v1778_v43  ;;  %v1670_v50 = vadd.f32 %v1669_v55, %v1446_v9  ;;  %3720 = vmatpush1.bf16.msra.mxu0 %v3719_v40  ;;  %v1521_v39 = vpop.permute.xlu1 %1520 }
 0x3f3   : > { %v1781_v59 = vmul.f32 0.01, %v1675_v49  ;;  %3721 = vmatprep.subr.bf16.mxu0 %v3979_v31 }
 0x3f4   : > { %v3722_v46 = vpack.c.bf16 %v1811_v45, %v1810_v56  ;;  %v1780_v54 = vmul.f32 0.01, %v1670_v50  ;;  %v3542_v60 = vpop.f32.mrb[26].mxu1 }
 0x3f5   : > { %v1813_v63 = vmax.f32 %v1675_v49, %v1781_v59  ;;  %v1685_v53 = vadd.f32 %v3542_v60, %v1461_v3  ;;  %v1679_v0 = vpop.f32.mrb[27].mxu1  ;;  %v1506_v33 = vpop.permute.xlu0 %1505 }
 0x3f6   : > { %v1812_v5 = vmax.f32 %v1670_v50, %v1780_v54  ;;  %v1680_v6 = vadd.f32 %v1679_v0, %v1456_v23  ;;  %3723 = vmatpush1.bf16.msra.mxu0 %v3722_v46  ;;  %v1531_v0 = vpop.permute.xlu1 %1530 }
 0x3f7   : > { %v1783_v11 = vmul.f32 0.01, %v1685_v53  ;;  %3724 = vmatprep.subr.bf16.mxu0 %v3979_v31 }
 0x3f8   : > { %v3725_v2 = vpack.c.bf16 %v1813_v63, %v1812_v5  ;;  %v1782_v9 = vmul.f32 0.01, %v1680_v6  ;;  %v3545_v12 = vpop.f32.mrb[28].mxu1 }
 0x3f9   : > { %v1815_v13 = vmax.f32 %v1685_v53, %v1783_v11  ;;  %v1695_v14 = vadd.f32 %v3545_v12, %v1471_v17  ;;  %v1689_v15 = vpop.f32.mrb[29].mxu1  ;;  %v1516_v42 = vpop.permute.xlu0 %1515 }
 0x3fa   : > { %v1814_v18 = vmax.f32 %v1680_v6, %v1782_v9  ;;  %v1690_v19 = vadd.f32 %v1689_v15, %v1466_v57  ;;  %3726 = vmatpush1.bf16.msra.mxu0 %v3725_v2 }
 0x3fb   : > { %v1785_v20 = vmul.f32 0.01, %v1695_v14  ;;  %3727 = vmatprep.subr.bf16.mxu0 %v3979_v31 }
 0x3fc   : > { %v3728_v3 = vpack.c.bf16 %v1815_v13, %v1814_v18  ;;  %v1784_v47 = vmul.f32 0.01, %v1690_v19  ;;  %v3548_v22 = vpop.f32.mrb[30].mxu1 }
 0x3fd   : > { %v1817_v23 = vmax.f32 %v1695_v14, %v1785_v20  ;;  %v1705_v48 = vadd.f32 %v3548_v22, %v1481_v41  ;;  %v1699_v7 = vpop.f32.mrb[31].mxu1  ;;  %v1526_v6 = vpop.permute.xlu0 %1525 }
 0x3fe   : > { %v1816_v24 = vmax.f32 %v1690_v19, %v1784_v47  ;;  %v1700_v25 = vadd.f32 %v1699_v7, %v1476_v44  ;;  %3729 = vmatpush1.bf16.msra.mxu0 %v3728_v3  ;;  %v1541_v20 = vpop.permute.xlu1 %1540 }
 0x3ff   : > { %v1787_v8 = vmul.f32 0.01, %v1705_v48  ;;  %3730 = vmatprep.subr.bf16.mxu0 %v3979_v31 }
 0x400   : > { %v3731_v51 = vpack.c.bf16 %v1817_v23, %v1816_v24  ;;  %v1786_v26 = vmul.f32 0.01, %v1700_v25  ;;  %v3551_v27 = vpop.f32.mrb[32].mxu1 }
 0x401   : > { %v1819_v52 = vmax.f32 %v1705_v48, %v1787_v8  ;;  %v1715_v16 = vadd.f32 %v3551_v27, %v1491_v1  ;;  %v1709_v28 = vpop.f32.mrb[33].mxu1  ;;  %v1536_v22 = vpop.permute.xlu0 %1535 }
 0x402   : > { %v1818_v17 = vmax.f32 %v1700_v25, %v1786_v26  ;;  %v1710_v32 = vadd.f32 %v1709_v28, %v1486_v10  ;;  %3732 = vmatpush1.bf16.msra.mxu0 %v3731_v51  ;;  %v1835_v28 = vld [vmem:[%s5276_s9 + $0x18] sm:$0xff] }
 0x403   : > { %v1789_v57 = vmul.f32 0.01, %v1715_v16  ;;  %3733 = vmatprep.subr.bf16.mxu0 %v3979_v31 }
 0x404   : > { %v3734_v34 = vpack.c.bf16 %v1819_v52, %v1818_v17  ;;  %v1788_v35 = vmul.f32 0.01, %v1710_v32  ;;  %v3554_v30 = vpop.f32.mrb[34].mxu1  ;;  %v1836_v17 = vld [vmem:[%s5276_s9 + $0x20] sm:$0xff] }
 0x405   : > { %v1821_v58 = vmax.f32 %v1715_v16, %v1789_v57  ;;  %v1725_v36 = vadd.f32 %v3554_v30, %v1501_v21  ;;  %v1719_v61 = vpop.f32.mrb[35].mxu1  ;;  %v1832_v16 = vld [vmem:[%s5276_s9] sm:$0xff]  ;;  %v1841_v57 = vld [vmem:[%s5276_s9 + $0x48] sm:$0xff]  ;;  %v1842_v30 = vld [vmem:[%s5276_s9 + $0x50] sm:$0xff] }
 0x406   : > { %v1820_v62 = vmax.f32 %v1710_v32, %v1788_v35  ;;  %v1720_v38 = vadd.f32 %v1719_v61, %v1496_v4  ;;  %3735 = vmatpush1.bf16.msra.mxu0 %v3734_v34  ;;  %v1839_v32 = vld [vmem:[%s5276_s9 + $0x38] sm:$0xff]  ;;  %v1840_v34 = vld [vmem:[%s5276_s9 + $0x40] sm:$0xff] }
 0x407   : > { %v1791_v37 = vmul.f32 0.01, %v1725_v36  ;;  %3736 = vmatprep.subr.bf16.mxu0 %v3979_v31  ;;  %v1843_v35 = vld [vmem:[%s5276_s9 + $0x58] sm:$0xff] }
 0x408   : > { %v3737_v41 = vpack.c.bf16 %v1821_v58, %v1820_v62  ;;  %v1790_v40 = vmul.f32 0.01, %v1720_v38  ;;  %v3557_v43 = vpop.f32.mrb[36].mxu1  ;;  %v1845_v58 = vld [vmem:[%s5276_s9 + $0x68] sm:$0xff]  ;;  %v1847_v61 = vld [vmem:[%s5276_s9 + $0x78] sm:$0xff]  ;;  %v1846_v62 = vld [vmem:[%s5276_s9 + $0x70] sm:$0xff] }
 0x409   : > { %v1823_v44 = vmax.f32 %v1725_v36, %v1791_v37  ;;  %v1735_v45 = vadd.f32 %v3557_v43, %v1511_v29  ;;  %v1729_v49 = vpop.f32.mrb[37].mxu1  ;;  %v1834_v29 = vld [vmem:[%s5276_s9 + $0x10] sm:$0xff]  ;;  %v1844_v36 = vld [vmem:[%s5276_s9 + $0x60] sm:$0xff] }
 0x40a   : > { %v1822_v55 = vmax.f32 %v1720_v38, %v1790_v40  ;;  %v1730_v56 = vadd.f32 %v1729_v49, %v1506_v33  ;;  %3738 = vmatpush1.bf16.msra.mxu0 %v3737_v41  ;;  %v1838_v33 = vld [vmem:[%s5276_s9 + $0x30] sm:$0xff]  ;;  %v1849_v38 = vld [vmem:[%s5276_s9 + $0x88] sm:$0xff]  ;;  %v1848_v37 = vld [vmem:[%s5276_s9 + $0x80] sm:$0xff] }
 0x40b   : > { %v1793_v50 = vmul.f32 0.01, %v1735_v45  ;;  %3739 = vmatprep.subr.bf16.mxu0 %v3979_v31  ;;  %v1850_v41 = vld [vmem:[%s5276_s9 + $0x90] sm:$0xff]  ;;  %v1853_v40 = vld [vmem:[%s5276_s9 + $0xa8] sm:$0xff]  ;;  %v1852_v43 = vld [vmem:[%s5276_s9 + $0xa0] sm:$0xff] }
 0x40c   : > { %v3740_v59 = vpack.c.bf16 %v1823_v44, %v1822_v55  ;;  %v1792_v46 = vmul.f32 0.01, %v1730_v56  ;;  %v3560_v54 = vpop.f32.mrb[38].mxu1  ;;  %v1854_v44 = vld [vmem:[%s5276_s9 + $0xb0] sm:$0xff]  ;;  %v1856_v49 = vld [vmem:[%s5276_s9 + $0xc0] sm:$0xff]  ;;  %v1859_v55 = vld [vmem:[%s5276_s9 + $0xd8] sm:$0xff] }
 0x40d   : > { %v1825_v60 = vmax.f32 %v1735_v45, %v1793_v50  ;;  %v1745_v63 = vadd.f32 %v3560_v54, %v1521_v39  ;;  %v1739_v53 = vpop.f32.mrb[39].mxu1  ;;  %v1851_v39 = vld [vmem:[%s5276_s9 + $0x98] sm:$0xff]  ;;  %v1857_v45 = vld [vmem:[%s5276_s9 + $0xc8] sm:$0xff]  ;;  %v1862_v54 = vld [vmem:[%s5276_s9 + $0xf0] sm:$0xff] }
 0x40e   : > { %v1824_v1 = vmax.f32 %v1730_v56, %v1792_v46  ;;  %v1740_v5 = vadd.f32 %v1739_v53, %v1516_v42  ;;  %3741 = vmatpush1.bf16.msra.mxu0 %v3740_v59  ;;  %v1855_v42 = vld [vmem:[%s5276_s9 + $0xb8] sm:$0xff]  ;;  %v1858_v56 = vld [vmem:[%s5276_s9 + $0xd0] sm:$0xff]  ;;  %v1861_v50 = vld [vmem:[%s5276_s9 + $0xe8] sm:$0xff] }
 0x40f   : > { %v1795_v10 = vmul.f32 0.01, %v1745_v63  ;;  %3742 = vmatprep.subr.bf16.mxu0 %v3979_v31  ;;  %v1860_v59 = vld [vmem:[%s5276_s9 + $0xe0] sm:$0xff]  ;;  %v1863_v46 = vld [vmem:[%s5276_s9 + $0xf8] sm:$0xff] }
 0x410   : > { %v3743_v11 = vpack.c.bf16 %v1825_v60, %v1824_v1  ;;  %v1794_v2 = vmul.f32 0.01, %v1740_v5  ;;  %v3563_v9 = vpop.f32.mrb[40].mxu1  ;;  %v1865_v60 = vld [vmem:[%s5276_s9 + $0x108] sm:$0xff]  ;;  %v1867_v53 = vld [vmem:[%s5276_s9 + $0x118] sm:$0xff] }
 0x411   : > { %v1827_v12 = vmax.f32 %v1745_v63, %v1795_v10  ;;  %v1755_v13 = vadd.f32 %v3563_v9, %v1531_v0  ;;  %v1749_v14 = vpop.f32.mrb[41].mxu1  ;;  %v1864_v63 = vld [vmem:[%s5276_s9 + $0x100] sm:$0xff]  ;;  %v1866_v0 = vld [vmem:[%s5276_s9 + $0x110] sm:$0xff]  ;;  %v1869_v1 = vld [vmem:[%s5276_s9 + $0x128] sm:$0xff] }
 0x412   : > { %v1826_v15 = vmax.f32 %v1740_v5, %v1794_v2  ;;  %v1750_v18 = vadd.f32 %v1749_v14, %v1526_v6  ;;  %3744 = vmatpush1.bf16.msra.mxu0 %v3743_v11  ;;  %v1868_v5 = vld [vmem:[%s5276_s9 + $0x120] sm:$0xff]  ;;  %v1871_v6 = vld [vmem:[%s5276_s9 + $0x138] sm:$0xff]  ;;  %v1870_v10 = vld [vmem:[%s5276_s9 + $0x130] sm:$0xff] }
 0x413   : > { %v1797_v19 = vmul.f32 0.01, %v1755_v13  ;;  %3745 = vmatprep.subr.bf16.mxu0 %v3979_v31  ;;  %v1873_v11 = vld [vmem:[%s5276_s9 + $0x148] sm:$0xff]  ;;  %v1872_v2 = vld [vmem:[%s5276_s9 + $0x140] sm:$0xff]  ;;  %v1875_v9 = vld [vmem:[%s5276_s9 + $0x158] sm:$0xff] }
 0x414   : > { %v3746_v21 = vpack.c.bf16 %v1827_v12, %v1826_v15  ;;  %v1796_v3 = vmul.f32 0.01, %v1750_v18  ;;  %v3566_v47 = vpop.f32.mrb[42].mxu1  ;;  %v1874_v12 = vld [vmem:[%s5276_s9 + $0x150] sm:$0xff]  ;;  %v1876_v14 = vld [vmem:[%s5276_s9 + $0x160] sm:$0xff]  ;;  %v1879_v15 = vld [vmem:[%s5276_s9 + $0x178] sm:$0xff] }
 0x415   : > { %v1829_v4 = vmax.f32 %v1755_v13, %v1797_v19  ;;  %v1765_v23 = vadd.f32 %v3566_v47, %v1541_v20  ;;  %v1759_v48 = vpop.f32.mrb[43].mxu1  ;;  %v1877_v13 = vld [vmem:[%s5276_s9 + $0x168] sm:$0xff]  ;;  %v1880_v20 = vld [vmem:[%s5276_s9 + $0x180] sm:$0xff] }
 0x416   : > { %v1828_v7 = vmax.f32 %v1750_v18, %v1796_v3  ;;  %v1760_v24 = vadd.f32 %v1759_v48, %v1536_v22  ;;  %3747 = vmatpush1.bf16.msra.mxu0 %v3746_v21  ;;  %v1878_v18 = vld [vmem:[%s5276_s9 + $0x170] sm:$0xff]  ;;  %v1881_v19 = vld [vmem:[%s5276_s9 + $0x188] sm:$0xff]  ;;  %v1883_v21 = vld [vmem:[%s5276_s9 + $0x198] sm:$0xff] }
 0x417   : > { %v1799_v25 = vmul.f32 0.01, %v1765_v23  ;;  %3748 = vmatprep.subr.bf16.mxu0 %v3979_v31  ;;  %v1882_v3 = vld [vmem:[%s5276_s9 + $0x190] sm:$0xff]  ;;  %v1885_v47 = vld [vmem:[%s5276_s9 + $0x1a8] sm:$0xff]  ;;  %v1884_v22 = vld [vmem:[%s5276_s9 + $0x1a0] sm:$0xff] }
 0x418   : > { %v3749_v8 = vpack.c.bf16 %v1829_v4, %v1828_v7  ;;  %v1798_v51 = vmul.f32 0.01, %v1760_v24  ;;  %v1887_v4 = vld [vmem:[%s5276_s9 + $0x1b8] sm:$0xff]  ;;  %v1889_v48 = vld [vmem:[%s5276_s9 + $0x1c8] sm:$0xff]  ;;  %v1888_v7 = vld [vmem:[%s5276_s9 + $0x1c0] sm:$0xff] }
 0x419   : > { %v1831_v26 = vmax.f32 %v1765_v23, %v1799_v25  ;;  %v1886_v23 = vld [vmem:[%s5276_s9 + $0x1b0] sm:$0xff] }
 0x41a   : > { %v1830_v27 = vmax.f32 %v1760_v24, %v1798_v51  ;;  %3750 = vmatpush1.bf16.msra.mxu0 %v3749_v8  ;;  %v1891_v24 = vld [vmem:[%s5276_s9 + $0x1d8] sm:$0xff]  ;;  %v1890_v25 = vld [vmem:[%s5276_s9 + $0x1d0] sm:$0xff]  ;;  %v1893_v8 = vld [vmem:[%s5276_s9 + $0x1e8] sm:$0xff] }
 0x41b   : > { %3751 = vmatprep.subr.bf16.mxu0 %v3979_v31  ;;  %v1837_v31 = vld [vmem:[%s5276_s9 + $0x28] sm:$0xff]  ;;  %v1892_v51 = vld [vmem:[%s5276_s9 + $0x1e0] sm:$0xff] }
 0x41c   : > { %v3752_v52 = vpack.c.bf16 %v1831_v26, %v1830_v27  ;;  %v1895_v26 = vld [vmem:[%s5276_s9 + $0x1f8] sm:$0xff]  ;;  %v1894_v27 = vld [vmem:[%s5276_s9 + $0x1f0] sm:$0xff] }
 0x41e   : > { %3753 = vmatpush1.bf16.msra.mxu0 %v3752_v52  ;;  %v4997_v52 = vpop.permute.xlu0 %2010 }
 0x421   : > { %2153 = vmatmul.mubr.f32.vlgmr.msra.gmra.mrb[16].mxu0 %v1832_v16  ;;  %v4999_v16 = vpop.permute.xlu1 %2015 }
 0x422   : > { %2157 = vmatprep.mubr.f32.mxu0 %v1835_v28  ;;  %v1931_v28 = vpop.permute.xlu0 %1930 }
 0x425   : > { %2158 = vmatmul.mubr.f32.gmra.mrb[18].mxu0 %v1834_v29  ;;  %v1936_v29 = vpop.permute.xlu1 %1935 }
 0x426   : > { %2162 = vmatprep.mubr.f32.mxu0 %v1837_v31  ;;  %v5001_v31 = vpop.permute.xlu0 %2020 }
 0x429   : > { %2163 = vmatmul.mubr.f32.gmra.mrb[20].mxu0 %v1836_v17  ;;  %v5003_v17 = vpop.permute.xlu1 %2025 }
 0x42a   : > { %2167 = vmatprep.mubr.f32.mxu0 %v1839_v32  ;;  %v1941_v32 = vpop.permute.xlu0 %1940 }
 0x42d   : > { %2168 = vmatmul.mubr.f32.gmra.mrb[22].mxu0 %v1838_v33  ;;  %v1946_v33 = vpop.permute.xlu1 %1945 }
 0x42e   : > { %2172 = vmatprep.mubr.f32.mxu0 %v1841_v57  ;;  %v5005_v57 = vpop.permute.xlu0 %2030 }
 0x431   : > { %2173 = vmatmul.mubr.f32.gmra.mrb[24].mxu0 %v1840_v34  ;;  %v5007_v34 = vpop.permute.xlu1 %2035 }
 0x432   : > { %2177 = vmatprep.mubr.f32.mxu0 %v1843_v35  ;;  %v1951_v35 = vpop.permute.xlu0 %1950 }
 0x435   : > { %2178 = vmatmul.mubr.f32.gmra.mrb[26].mxu0 %v1842_v30  ;;  %v1956_v30 = vpop.permute.xlu1 %1955 }
 0x436   : > { %2182 = vmatprep.mubr.f32.mxu0 %v1845_v58 }
 0x439   : > { %2183 = vmatmul.mubr.f32.gmra.mrb[28].mxu0 %v1844_v36 }
 0x43a   : > { %2187 = vmatprep.mubr.f32.mxu0 %v1847_v61 }
 0x43d   : > { %2188 = vmatmul.mubr.f32.gmra.mrb[30].mxu0 %v1846_v62  ;;  %v5009_v62 = vpop.permute.xlu0 %2040 }
 0x43e   : > { %2192 = vmatprep.mubr.f32.mxu0 %v1849_v38 }
 0x441   : > { %2193 = vmatmul.mubr.f32.gmra.mrb[32].mxu0 %v1848_v37 }
 0x442   : > { %2197 = vmatprep.mubr.f32.mxu0 %v1851_v39 }
 0x445   : > { %2198 = vmatmul.mubr.f32.gmra.mrb[34].mxu0 %v1850_v41 }
 0x446   : > { %2202 = vmatprep.mubr.f32.mxu0 %v1853_v40  ;;  %v5011_v40 = vpop.permute.xlu1 %2045 }
 0x449   : > { %2203 = vmatmul.mubr.f32.gmra.mrb[36].mxu0 %v1852_v43  ;;  %v2378_v43 = vld [vmem:[%s5278_s11 + $0x8] sm:$0xff] }
 0x44a   : > { %2207 = vmatprep.mubr.f32.mxu0 %v1855_v42  ;;  %2569 = vmatprep.mubr.f32.mxu1 %v2378_v43 }
 0x44d   : > { %2208 = vmatmul.mubr.f32.gmra.mrb[38].mxu0 %v1854_v44  ;;  %v1961_v44 = vpop.permute.xlu0 %1960 }
 0x44e   : > { %2212 = vmatprep.mubr.f32.mxu0 %v1857_v45 }
 0x451   : > { %2213 = vmatmul.mubr.f32.gmra.mrb[40].mxu0 %v1856_v49 }
 0x452   : > { %2217 = vmatprep.mubr.f32.mxu0 %v1859_v55 }
 0x455   : > { %2218 = vmatmul.mubr.f32.gmra.mrb[42].mxu0 %v1858_v56 }
 0x456   : > { %2222 = vmatprep.mubr.f32.mxu0 %v1861_v50 }
 0x459   : > { %2223 = vmatmul.mubr.f32.gmra.mrb[44].mxu0 %v1860_v59 }
 0x45a   : > { %2227 = vmatprep.mubr.f32.mxu0 %v1863_v46  ;;  %v1966_v46 = vpop.permute.xlu1 %1965 }
 0x45d   : > { %2228 = vmatmul.mubr.f32.gmra.mrb[46].mxu0 %v1862_v54 }
 0x45e   : > { %2232 = vmatprep.mubr.f32.mxu0 %v1865_v60 }
 0x461   : > { %2233 = vmatmul.mubr.f32.gmra.mrb[48].mxu0 %v1864_v63 }
 0x462   : > { %2237 = vmatprep.mubr.f32.mxu0 %v1867_v53 }
 0x465   : > { %2238 = vmatmul.mubr.f32.gmra.mrb[50].mxu0 %v1866_v0  ;;  %v5018_v0 = vpop.permute.xlu0 %2050 }
 0x466   : > { %2242 = vmatprep.mubr.f32.mxu0 %v1869_v1 }
 0x469   : > { %2243 = vmatmul.mubr.f32.gmra.mrb[52].mxu0 %v1868_v5 }
 0x46a   : > { %2247 = vmatprep.mubr.f32.mxu0 %v1871_v6 }
 0x46d   : > { %2248 = vmatmul.mubr.f32.gmra.mrb[54].mxu0 %v1870_v10 }
 0x46e   : > { %2252 = vmatprep.mubr.f32.mxu0 %v1873_v11 }
 0x471   : > { %2253 = vmatmul.mubr.f32.gmra.mrb[56].mxu0 %v1872_v2 }
 0x472   : > { %2257 = vmatprep.mubr.f32.mxu0 %v1875_v9  ;;  %v5020_v9 = vpop.permute.xlu1 %2055 }
 0x475   : > { %2258 = vmatmul.mubr.f32.gmra.mrb[58].mxu0 %v1874_v12 }
 0x476   : > { %2262 = vmatprep.mubr.f32.mxu0 %v1877_v13  ;;  %v1971_v13 = vpop.permute.xlu0 %1970 }
 0x479   : > { %2263 = vmatmul.mubr.f32.gmra.mrb[60].mxu0 %v1876_v14 }
 0x47a   : > { %2267 = vmatprep.mubr.f32.mxu0 %v1879_v15 }
 0x47d   : > { %2268 = vmatmul.mubr.f32.gmra.mrb[62].mxu0 %v1878_v18 }
 0x47e   : > { %2272 = vmatprep.mubr.f32.mxu0 %v1881_v19 }
 0x481   : > { %2273 = vmatmul.mubr.f32.gmra.mrb[64].mxu0 %v1880_v20 }
 0x482   : > { %2277 = vmatprep.mubr.f32.mxu0 %v1883_v21  ;;  %v1976_v21 = vpop.permute.xlu1 %1975 }
 0x485   : > { %2278 = vmatmul.mubr.f32.gmra.mrb[66].mxu0 %v1882_v3 }
 0x486   : > { %2282 = vmatprep.mubr.f32.mxu0 %v1885_v47 }
 0x489   : > { %2283 = vmatmul.mubr.f32.gmra.mrb[68].mxu0 %v1884_v22 }
 0x48a   : > { %2287 = vmatprep.mubr.f32.mxu0 %v1887_v4 }
 0x48d   : > { %2288 = vmatmul.mubr.f32.gmra.mrb[70].mxu0 %v1886_v23 }
 0x48e   : > { %2292 = vmatprep.mubr.f32.mxu0 %v1889_v48  ;;  %v5024_v48 = vpop.permute.xlu0 %2060 }
 0x491   : > { %2293 = vmatmul.mubr.f32.gmra.mrb[72].mxu0 %v1888_v7 }
 0x492   : > { %2297 = vmatprep.mubr.f32.mxu0 %v1891_v24 }
 0x495   : > { %2298 = vmatmul.mubr.f32.gmra.mrb[74].mxu0 %v1890_v25 }
 0x496   : > { %2302 = vmatprep.mubr.f32.mxu0 %v1893_v8 }
 0x499   : > { %2303 = vmatmul.mubr.f32.gmra.mrb[76].mxu0 %v1892_v51 }
 0x49a   : > { %2307 = vmatprep.mubr.f32.mxu0 %v1895_v26  ;;  %v5028_v26 = vpop.permute.xlu1 %2065 }
 0x49d   : > { %2308 = vmatmul.mubr.f32.gmra.mrb[78].mxu0 %v1894_v27 }
 0x4f4   : > { %v2154_v58 = vpop.f32.mrb[16].mxu0 }
 0x4f5   : > { %v2155_v36 = vadd.f32 %v2154_v58, %v1931_v28  ;;  %v2156_v61 = vpop.f32.mrb[17].mxu0  ;;  %v1981_v28 = vpop.permute.xlu0 %1980 }
 0x4f7   : > { %v2313_v37 = vmul.f32 0.01, %v2155_v36 }
 0x4f8   : > { %v2159_v38 = vpop.f32.mrb[18].mxu0 }
 0x4f9   : > { %v2160_v39 = vadd.f32 %v2159_v38, %v1936_v29  ;;  %v2161_v41 = vpop.f32.mrb[19].mxu0  ;;  %v2345_v49 = vmax.f32 %v2155_v36, %v2313_v37  ;;  %v1986_v36 = vpop.permute.xlu1 %1985 }
 0x4fa   : > { %v5032_v41 = vpop.permute.xlu0 %2070 }
 0x4fb   : > { %v2314_v42 = vmul.f32 0.01, %v2160_v39 }
 0x4fc   : > { %v2164_v45 = vpop.f32.mrb[20].mxu0 }
 0x4fd   : > { %v2346_v55 = vmax.f32 %v2160_v39, %v2314_v42  ;;  %v2165_v56 = vadd.f32 %v2164_v45, %v1941_v32  ;;  %v2166_v50 = vpop.f32.mrb[21].mxu0 }
 0x4ff   : > { %v5016_v59 = vpack.c.bf16 %v2346_v55, %v2345_v49  ;;  %v2315_v60 = vmul.f32 0.01, %v2165_v56 }
 0x500   : > { %v2169_v54 = vpop.f32.mrb[22].mxu0 }
 0x501   : > { %v2170_v63 = vadd.f32 %v2169_v54, %v1946_v33  ;;  %v2171_v53 = vpop.f32.mrb[23].mxu0  ;;  %v2347_v6 = vmax.f32 %v2165_v56, %v2315_v60  ;;  %v5034_v56 = vpop.permute.xlu1 %2075 }
 0x503   : > { %v2316_v1 = vmul.f32 0.01, %v2170_v63 }
 0x504   : > { %v2174_v5 = vpop.f32.mrb[24].mxu0 }
 0x505   : > { %v2348_v10 = vmax.f32 %v2170_v63, %v2316_v1  ;;  %v2175_v11 = vadd.f32 %v2174_v5, %v1951_v35  ;;  %v2176_v2 = vpop.f32.mrb[25].mxu0  ;;  %v1996_v5 = vpop.permute.xlu1 %1995 }
 0x507   : > { %v5022_v12 = vpack.c.bf16 %v2348_v10, %v2347_v6  ;;  %v2317_v15 = vmul.f32 0.01, %v2175_v11 }
 0x508   : > { %v2179_v14 = vpop.f32.mrb[26].mxu0 }
 0x509   : > { %v2180_v18 = vadd.f32 %v2179_v14, %v1956_v30  ;;  %v2181_v19 = vpop.f32.mrb[27].mxu0  ;;  %v2349_v47 = vmax.f32 %v2175_v11, %v2317_v15 }
 0x50b   : > { %v2318_v20 = vmul.f32 0.01, %v2180_v18 }
 0x50c   : > { %v2184_v3 = vpop.f32.mrb[28].mxu0 }
 0x50d   : > { %v2350_v22 = vmax.f32 %v2180_v18, %v2318_v20  ;;  %v2185_v4 = vadd.f32 %v2184_v3, %v1961_v44  ;;  %v2186_v23 = vpop.f32.mrb[29].mxu0  ;;  %v5042_v3 = vpop.permute.xlu1 %2085 }
 0x50f   : > { %v5026_v7 = vpack.c.bf16 %v2350_v22, %v2349_v47  ;;  %v2319_v25 = vmul.f32 0.01, %v2185_v4 }
 0x510   : > { %v2189_v24 = vpop.f32.mrb[30].mxu0 }
 0x511   : > { %v2190_v8 = vadd.f32 %v2189_v24, %v1966_v46  ;;  %v2191_v51 = vpop.f32.mrb[31].mxu0  ;;  %v2351_v32 = vmax.f32 %v2185_v4, %v2319_v25  ;;  %v1991_v46 = vpop.permute.xlu0 %1990 }
 0x513   : > { %v2320_v27 = vmul.f32 0.01, %v2190_v8 }
 0x514   : > { %v2194_v29 = vpop.f32.mrb[32].mxu0 }
 0x515   : > { %v2352_v33 = vmax.f32 %v2190_v8, %v2320_v27  ;;  %v2195_v35 = vadd.f32 %v2194_v29, %v1971_v13  ;;  %v2196_v30 = vpop.f32.mrb[33].mxu0  ;;  %v5038_v14 = vpop.permute.xlu0 %2080 }
 0x516   : > { %v2006_v27 = vpop.permute.xlu1 %2005 }
 0x517   : > { %v5030_v58 = vpack.c.bf16 %v2352_v33, %v2351_v32  ;;  %v2321_v38 = vmul.f32 0.01, %v2195_v35 }
 0x518   : > { %v2199_v61 = vpop.f32.mrb[34].mxu0 }
 0x519   : > { %v2200_v37 = vadd.f32 %v2199_v61, %v1976_v21  ;;  %v2201_v39 = vpop.f32.mrb[35].mxu0  ;;  %v2353_v44 = vmax.f32 %v2195_v35, %v2321_v38  ;;  %v2001_v22 = vpop.permute.xlu0 %2000 }
 0x51b   : > { %v2322_v43 = vmul.f32 0.01, %v2200_v37 }
 0x51c   : > { %v2204_v42 = vpop.f32.mrb[36].mxu0 }
 0x51d   : > { %v2354_v45 = vmax.f32 %v2200_v37, %v2322_v43  ;;  %v2205_v49 = vadd.f32 %v2204_v42, %v1981_v28  ;;  %v2206_v55 = vpop.f32.mrb[37].mxu0 }
 0x51f   : > { %v5036_v50 = vpack.c.bf16 %v2354_v45, %v2353_v44  ;;  %v2323_v60 = vmul.f32 0.01, %v2205_v49 }
 0x520   : > { %v2209_v54 = vpop.f32.mrb[38].mxu0 }
 0x521   : > { %v2210_v63 = vadd.f32 %v2209_v54, %v1986_v36  ;;  %v2211_v53 = vpop.f32.mrb[39].mxu0  ;;  %v2355_v10 = vmax.f32 %v2205_v49, %v2323_v60 }
 0x523   : > { %v2324_v1 = vmul.f32 0.01, %v2210_v63 }
 0x524   : > { %v2214_v6 = vpop.f32.mrb[40].mxu0 }
 0x525   : > { %v2356_v11 = vmax.f32 %v2210_v63, %v2324_v1  ;;  %v2215_v2 = vadd.f32 %v2214_v6, %v1991_v46  ;;  %v2216_v13 = vpop.f32.mrb[41].mxu0 }
 0x527   : > { %v5040_v15 = vpack.c.bf16 %v2356_v11, %v2355_v10  ;;  %v2325_v19 = vmul.f32 0.01, %v2215_v2 }
 0x528   : > { %v2219_v18 = vpop.f32.mrb[42].mxu0 }
 0x529   : > { %v2220_v20 = vadd.f32 %v2219_v18, %v1996_v5  ;;  %v2221_v21 = vpop.f32.mrb[43].mxu0  ;;  %v2357_v23 = vmax.f32 %v2215_v2, %v2325_v19 }
 0x52b   : > { %v2326_v47 = vmul.f32 0.01, %v2220_v20 }
 0x52c   : > { %v2224_v4 = vpop.f32.mrb[44].mxu0 }
 0x52d   : > { %v2358_v24 = vmax.f32 %v2220_v20, %v2326_v47  ;;  %v2225_v25 = vadd.f32 %v2224_v4, %v2001_v22  ;;  %v2226_v8 = vpop.f32.mrb[45].mxu0 }
 0x52f   : > { %v5044_v51 = vpack.c.bf16 %v2358_v24, %v2357_v23  ;;  %v2327_v29 = vmul.f32 0.01, %v2225_v25 }
 0x530   : > { %v2229_v28 = vpop.f32.mrb[46].mxu0 }
 0x531   : > { %v2230_v32 = vadd.f32 %v2229_v28, %v2006_v27  ;;  %v2231_v33 = vpop.f32.mrb[47].mxu0  ;;  %v2359_v36 = vmax.f32 %v2225_v25, %v2327_v29 }
 0x533   : > { %v2328_v35 = vmul.f32 0.01, %v2230_v32 }
 0x534   : > { %v2234_v30 = vpop.f32.mrb[48].mxu0 }
 0x535   : > { %v2360_v61 = vmax.f32 %v2230_v32, %v2328_v35  ;;  %v2235_v38 = vadd.f32 %v2234_v30, %v4997_v52  ;;  %v2236_v37 = vpop.f32.mrb[49].mxu0 }
 0x537   : > { %v5047_v39 = vpack.c.bf16 %v2360_v61, %v2359_v36  ;;  %v2329_v42 = vmul.f32 0.01, %v2235_v38 }
 0x538   : > { %v2239_v43 = vpop.f32.mrb[50].mxu0 }
 0x539   : > { %v2240_v44 = vadd.f32 %v2239_v43, %v4999_v16  ;;  %v2241_v45 = vpop.f32.mrb[51].mxu0  ;;  %v2361_v46 = vmax.f32 %v2235_v38, %v2329_v42 }
 0x53b   : > { %v2330_v49 = vmul.f32 0.01, %v2240_v44 }
 0x53c   : > { %v2244_v55 = vpop.f32.mrb[52].mxu0 }
 0x53d   : > { %v2362_v54 = vmax.f32 %v2240_v44, %v2330_v49  ;;  %v2245_v60 = vadd.f32 %v2244_v55, %v5001_v31  ;;  %v2246_v63 = vpop.f32.mrb[53].mxu0 }
 0x53f   : > { %v3754_v53 = vpack.c.bf16 %v2362_v54, %v2361_v46  ;;  %v2331_v5 = vmul.f32 0.01, %v2245_v60 }
 0x540   : > { %v2249_v1 = vpop.f32.mrb[54].mxu0 }
 0x541   : > { %v2250_v52 = vadd.f32 %v2249_v1, %v5003_v17  ;;  %v2251_v6 = vpop.f32.mrb[55].mxu0  ;;  %3755 = vmatprep.subr.bf16.mxu1 %v3754_v53  ;;  %v2363_v16 = vmax.f32 %v2245_v60, %v2331_v5 }
 0x542   : > { %3757 = vmatpush3.bf16.msra.mxu1 %v5016_v59 }
 0x543   : > { %v2332_v10 = vmul.f32 0.01, %v2250_v52 }
 0x544   : > { %v2254_v11 = vpop.f32.mrb[56].mxu0 }
 0x545   : > { %v2364_v2 = vmax.f32 %v2250_v52, %v2332_v10  ;;  %v2255_v13 = vadd.f32 %v2254_v11, %v5005_v57  ;;  %v2256_v18 = vpop.f32.mrb[57].mxu0 }
 0x547   : > { %v3758_v19 = vpack.c.bf16 %v2364_v2, %v2363_v16  ;;  %v2333_v31 = vmul.f32 0.01, %v2255_v13 }
 0x548   : > { %v2259_v20 = vpop.f32.mrb[58].mxu0 }
 0x549   : > { %v2260_v21 = vadd.f32 %v2259_v20, %v5007_v34  ;;  %v2261_v47 = vpop.f32.mrb[59].mxu0  ;;  %3759 = vmatprep.subr.bf16.mxu1 %v3758_v19  ;;  %v2365_v4 = vmax.f32 %v2255_v13, %v2333_v31 }
 0x54a   : > { %3761 = vmatpush3.bf16.msra.mxu1 %v5022_v12  ;;  %v2380_v47 = vld [vmem:[%s5278_s11 + $0x18] sm:$0xff] }
 0x54b   : > { %v2334_v17 = vmul.f32 0.01, %v2260_v21 }
 0x54c   : > { %v2264_v22 = vpop.f32.mrb[60].mxu0 }
 0x54d   : > { %v2366_v59 = vmax.f32 %v2260_v21, %v2334_v17  ;;  %v2265_v23 = vadd.f32 %v2264_v22, %v5009_v62  ;;  %v2266_v24 = vpop.f32.mrb[61].mxu0  ;;  %v2384_v17 = vld [vmem:[%s5278_s11 + $0x38] sm:$0xff]  ;;  %v2383_v22 = vld [vmem:[%s5278_s11 + $0x30] sm:$0xff] }
 0x54e   : > { %v2387_v24 = vld [vmem:[%s5278_s11 + $0x50] sm:$0xff] }
 0x54f   : > { %v3762_v25 = vpack.c.bf16 %v2366_v59, %v2365_v4  ;;  %v2335_v57 = vmul.f32 0.01, %v2265_v23  ;;  %v2386_v4 = vld [vmem:[%s5278_s11 + $0x48] sm:$0xff]  ;;  %v2385_v59 = vld [vmem:[%s5278_s11 + $0x40] sm:$0xff] }
 0x550   : > { %v2269_v8 = vpop.f32.mrb[62].mxu0 }
 0x551   : > { %v2270_v27 = vadd.f32 %v2269_v8, %v5011_v40  ;;  %v2271_v28 = vpop.f32.mrb[63].mxu0  ;;  %3763 = vmatprep.subr.bf16.mxu1 %v3762_v25  ;;  %v2367_v32 = vmax.f32 %v2265_v23, %v2335_v57  ;;  %v2388_v23 = vld [vmem:[%s5278_s11 + $0x58] sm:$0xff]  ;;  %v2390_v25 = vld [vmem:[%s5278_s11 + $0x68] sm:$0xff]  ;;  %v2389_v8 = vld [vmem:[%s5278_s11 + $0x60] sm:$0xff] }
 0x552   : > { %3765 = vmatpush3.bf16.msra.mxu1 %v5026_v7  ;;  %v2392_v57 = vld [vmem:[%s5278_s11 + $0x78] sm:$0xff]  ;;  %v2394_v28 = vld [vmem:[%s5278_s11 + $0x88] sm:$0xff] }
 0x553   : > { %v2336_v34 = vmul.f32 0.01, %v2270_v27 }
 0x554   : > { %v2274_v29 = vpop.f32.mrb[64].mxu0 }
 0x555   : > { %v2368_v12 = vmax.f32 %v2270_v27, %v2336_v34  ;;  %v2275_v33 = vadd.f32 %v2274_v29, %v5018_v0  ;;  %v2276_v35 = vpop.f32.mrb[65].mxu0  ;;  %v2391_v27 = vld [vmem:[%s5278_s11 + $0x70] sm:$0xff]  ;;  %v2393_v34 = vld [vmem:[%s5278_s11 + $0x80] sm:$0xff]  ;;  %v2396_v29 = vld [vmem:[%s5278_s11 + $0x98] sm:$0xff] }
 0x556   : > { %v2400_v35 = vld [vmem:[%s5278_s11 + $0xb8] sm:$0xff] }
 0x557   : > { %v3766_v30 = vpack.c.bf16 %v2368_v12, %v2367_v32  ;;  %v2337_v62 = vmul.f32 0.01, %v2275_v33  ;;  %v2395_v32 = vld [vmem:[%s5278_s11 + $0x90] sm:$0xff]  ;;  %v2398_v12 = vld [vmem:[%s5278_s11 + $0xa8] sm:$0xff] }
 0x558   : > { %v2279_v36 = vpop.f32.mrb[66].mxu0 }
 0x559   : > { %v2280_v61 = vadd.f32 %v2279_v36, %v5020_v9  ;;  %v2281_v38 = vpop.f32.mrb[67].mxu0  ;;  %3767 = vmatprep.subr.bf16.mxu1 %v3766_v30  ;;  %v2369_v43 = vmax.f32 %v2275_v33, %v2337_v62  ;;  %v2397_v33 = vld [vmem:[%s5278_s11 + $0xa0] sm:$0xff]  ;;  %v2399_v30 = vld [vmem:[%s5278_s11 + $0xb0] sm:$0xff]  ;;  %v2402_v36 = vld [vmem:[%s5278_s11 + $0xc8] sm:$0xff] }
 0x55a   : > { %3769 = vmatpush3.bf16.msra.mxu1 %v5030_v58  ;;  %v2401_v62 = vld [vmem:[%s5278_s11 + $0xc0] sm:$0xff]  ;;  %v2403_v38 = vld [vmem:[%s5278_s11 + $0xd0] sm:$0xff] }
 0x55b   : > { %v2338_v40 = vmul.f32 0.01, %v2280_v61 }
 0x55c   : > { %v2284_v37 = vpop.f32.mrb[68].mxu0 }
 0x55d   : > { %v2370_v7 = vmax.f32 %v2280_v61, %v2338_v40  ;;  %v2285_v42 = vadd.f32 %v2284_v37, %v5024_v48  ;;  %v2286_v44 = vpop.f32.mrb[69].mxu0  ;;  %v2404_v61 = vld [vmem:[%s5278_s11 + $0xd8] sm:$0xff]  ;;  %v2406_v40 = vld [vmem:[%s5278_s11 + $0xe8] sm:$0xff]  ;;  %v2405_v37 = vld [vmem:[%s5278_s11 + $0xe0] sm:$0xff] }
 0x55f   : > { %v3770_v45 = vpack.c.bf16 %v2370_v7, %v2369_v43  ;;  %v2339_v0 = vmul.f32 0.01, %v2285_v42  ;;  %v2408_v43 = vld [vmem:[%s5278_s11 + $0xf8] sm:$0xff]  ;;  %v2407_v7 = vld [vmem:[%s5278_s11 + $0xf0] sm:$0xff] }
 0x560   : > { %v2289_v49 = vpop.f32.mrb[70].mxu0 }
 0x561   : > { %v2290_v55 = vadd.f32 %v2289_v49, %v5028_v26  ;;  %v2291_v46 = vpop.f32.mrb[71].mxu0  ;;  %3771 = vmatprep.subr.bf16.mxu1 %v3770_v45  ;;  %v2371_v60 = vmax.f32 %v2285_v42, %v2339_v0  ;;  %v2682_v42 = vld [vmem:[%s5280_s13] sm:$0xff]  ;;  %v2428_v0 = vpop.permute.xlu0 %2427 }
 0x562   : > { %3773 = vmatpush3.bf16.msra.mxu1 %v5036_v50 }
 0x563   : > { %v2340_v9 = vmul.f32 0.01, %v2290_v55 }
 0x564   : > { %v2294_v54 = vpop.f32.mrb[72].mxu0 }
 0x565   : > { %v2372_v58 = vmax.f32 %v2290_v55, %v2340_v9  ;;  %v2295_v63 = vadd.f32 %v2294_v54, %v5032_v41  ;;  %v2296_v53 = vpop.f32.mrb[73].mxu0 }
 0x567   : > { %v3774_v1 = vpack.c.bf16 %v2372_v58, %v2371_v60  ;;  %v2341_v48 = vmul.f32 0.01, %v2295_v63  ;;  %v2433_v60 = vpop.permute.xlu1 %2432 }
 0x568   : > { %v2299_v5 = vpop.f32.mrb[74].mxu0 }
 0x569   : > { %v2300_v52 = vadd.f32 %v2299_v5, %v5034_v56  ;;  %v2301_v6 = vpop.f32.mrb[75].mxu0  ;;  %3775 = vmatprep.subr.bf16.mxu1 %v3774_v1  ;;  %v2373_v11 = vmax.f32 %v2295_v63, %v2341_v48 }
 0x56a   : > { %3777 = vmatpush3.bf16.msra.mxu1 %v5040_v15 }
 0x56b   : > { %v2342_v26 = vmul.f32 0.01, %v2300_v52 }
 0x56c   : > { %v2304_v10 = vpop.f32.mrb[76].mxu0 }
 0x56d   : > { %v2374_v50 = vmax.f32 %v2300_v52, %v2342_v26  ;;  %v2305_v16 = vadd.f32 %v2304_v10, %v5038_v14  ;;  %v2306_v2 = vpop.f32.mrb[77].mxu0  ;;  %v2377_v14 = vld [vmem:[%s5278_s11] sm:$0xff]  ;;  %v2438_v52 = vpop.permute.xlu0 %2437 }
 0x56f   : > { %v3778_v13 = vpack.c.bf16 %v2374_v50, %v2373_v11  ;;  %v2343_v41 = vmul.f32 0.01, %v2305_v16 }
 0x570   : > { %v2309_v18 = vpop.f32.mrb[78].mxu0 }
 0x571   : > { %v2310_v19 = vadd.f32 %v2309_v18, %v5042_v3  ;;  %v2311_v20 = vpop.f32.mrb[79].mxu0  ;;  %3779 = vmatprep.subr.bf16.mxu1 %v3778_v13  ;;  %v2375_v31 = vmax.f32 %v2305_v16, %v2343_v41  ;;  %v2379_v3 = vld [vmem:[%s5278_s11 + $0x10] sm:$0xff]  ;;  %v2443_v13 = vpop.permute.xlu1 %2442 }
 0x572   : > { %3781 = vmatpush3.bf16.msra.mxu1 %v5044_v51  ;;  %v2382_v51 = vld [vmem:[%s5278_s11 + $0x28] sm:$0xff] }
 0x573   : > { %v2344_v56 = vmul.f32 0.01, %v2310_v19 }
 0x575   : > { %v2376_v21 = vmax.f32 %v2310_v19, %v2344_v56 }
 0x577   : > { %v3782_v15 = vpack.c.bf16 %v2376_v21, %v2375_v31  ;;  %v2448_v21 = vpop.permute.xlu0 %2447 }
 0x579   : > { %3783 = vmatprep.subr.bf16.mxu1 %v3782_v15 }
 0x57a   : > { %3785 = vmatpush3.bf16.msra.mxu1 %v5047_v39  ;;  %v2381_v39 = vld [vmem:[%s5278_s11 + $0x20] sm:$0xff] }
 0x57d   : > { %2570 = vmatmul.mubr.f32.vlgmr.msra.gmra.mrb[44].mxu1 %v2377_v14 }
 0x57e   : > { %2574 = vmatprep.mubr.f32.mxu1 %v2380_v47 }
 0x581   : > { %2575 = vmatmul.mubr.f32.gmra.mrb[46].mxu1 %v2379_v3 }
 0x582   : > { %2579 = vmatprep.mubr.f32.mxu1 %v2382_v51 }
 0x585   : > { %2580 = vmatmul.mubr.f32.gmra.mrb[48].mxu1 %v2381_v39 }
 0x586   : > { %2584 = vmatprep.mubr.f32.mxu1 %v2384_v17 }
 0x589   : > { %2585 = vmatmul.mubr.f32.gmra.mrb[50].mxu1 %v2383_v22  ;;  %v2453_v22 = vpop.permute.xlu1 %2452 }
 0x58a   : > { %2589 = vmatprep.mubr.f32.mxu1 %v2386_v4 }
 0x58d   : > { %2590 = vmatmul.mubr.f32.gmra.mrb[52].mxu1 %v2385_v59 }
 0x58e   : > { %2594 = vmatprep.mubr.f32.mxu1 %v2388_v23 }
 0x591   : > { %2595 = vmatmul.mubr.f32.gmra.mrb[54].mxu1 %v2387_v24 }
 0x592   : > { %2599 = vmatprep.mubr.f32.mxu1 %v2390_v25 }
 0x595   : > { %2600 = vmatmul.mubr.f32.gmra.mrb[56].mxu1 %v2389_v8 }
 0x596   : > { %2604 = vmatprep.mubr.f32.mxu1 %v2392_v57  ;;  %v2458_v57 = vpop.permute.xlu0 %2457 }
 0x599   : > { %2605 = vmatmul.mubr.f32.gmra.mrb[58].mxu1 %v2391_v27 }
 0x59a   : > { %2609 = vmatprep.mubr.f32.mxu1 %v2394_v28 }
 0x59d   : > { %2610 = vmatmul.mubr.f32.gmra.mrb[60].mxu1 %v2393_v34 }
 0x59e   : > { %2614 = vmatprep.mubr.f32.mxu1 %v2396_v29 }
 0x5a1   : > { %2615 = vmatmul.mubr.f32.gmra.mrb[62].mxu1 %v2395_v32 }
 0x5a2   : > { %2619 = vmatprep.mubr.f32.mxu1 %v2398_v12 }
 0x5a5   : > { %2620 = vmatmul.mubr.f32.gmra.mrb[64].mxu1 %v2397_v33 }
 0x5a6   : > { %2624 = vmatprep.mubr.f32.mxu1 %v2400_v35  ;;  %v2463_v35 = vpop.permute.xlu1 %2462 }
 0x5a9   : > { %2625 = vmatmul.mubr.f32.gmra.mrb[66].mxu1 %v2399_v30 }
 0x5aa   : > { %2629 = vmatprep.mubr.f32.mxu1 %v2402_v36 }
 0x5ad   : > { %2630 = vmatmul.mubr.f32.gmra.mrb[68].mxu1 %v2401_v62 }
 0x5ae   : > { %2634 = vmatprep.mubr.f32.mxu1 %v2404_v61 }
 0x5b1   : > { %2635 = vmatmul.mubr.f32.gmra.mrb[70].mxu1 %v2403_v38 }
 0x5b2   : > { %2639 = vmatprep.mubr.f32.mxu1 %v2406_v40 }
 0x5b5   : > { %2640 = vmatmul.mubr.f32.gmra.mrb[72].mxu1 %v2405_v37  ;;  %v2468_v37 = vpop.permute.xlu0 %2467 }
 0x5b6   : > { %2644 = vmatprep.mubr.f32.mxu1 %v2408_v43 }
 0x5b9   : > { %2645 = vmatmul.mubr.f32.gmra.mrb[74].mxu1 %v2407_v7 }
 0x5ba   : > { %3599 = vmatprep.mubr.f32.mxu1 %v2682_v42 }
 0x650   : > { %v3327_v44 = vpop.f32.mrb[44].mxu1 }
 0x651   : > { %v3328_v45 = vpop.f32.mrb[45].mxu1 }
 0x652   : > { %v3329_v49 = vadd.f32 %v3328_v45, %v3327_v44 }
 0x654   : > { %v2572_v55 = vadd.f32 %v3329_v49, %v2428_v0  ;;  %v3330_v46 = vpop.f32.mrb[46].mxu1 }
 0x655   : > { %v3331_v9 = vpop.f32.mrb[47].mxu1 }
 0x656   : > { %v3332_v54 = vadd.f32 %v3331_v9, %v3330_v46  ;;  %v2650_v58 = vmul.f32 0.01, %v2572_v55 }
 0x658   : > { %v2577_v63 = vadd.f32 %v3332_v54, %v2433_v60  ;;  %v3333_v53 = vpop.f32.mrb[48].mxu1  ;;  %v2666_v6 = vmax.f32 %v2572_v55, %v2650_v58  ;;  %v2473_v55 = vpop.permute.xlu1 %2472 }
 0x659   : > { %v3334_v1 = vpop.f32.mrb[49].mxu1 }
 0x65a   : > { %v2651_v5 = vmul.f32 0.01, %v2577_v63  ;;  %v3335_v48 = vadd.f32 %v3334_v1, %v3333_v53  ;;  %v2478_v53 = vpop.permute.xlu0 %2477 }
 0x65c   : > { %v2667_v26 = vmax.f32 %v2577_v63, %v2651_v5  ;;  %v2582_v10 = vadd.f32 %v3335_v48, %v2438_v52  ;;  %v3336_v11 = vpop.f32.mrb[50].mxu1 }
 0x65d   : > { %v3337_v50 = vpop.f32.mrb[51].mxu1 }
 0x65e   : > { %v3338_v16 = vadd.f32 %v3337_v50, %v3336_v11  ;;  %v3786_v2 = vpack.c.bf16 %v2667_v26, %v2666_v6  ;;  %v2652_v18 = vmul.f32 0.01, %v2582_v10  ;;  %v2483_v11 = vpop.permute.xlu1 %2482 }
 0x660   : > { %v2587_v41 = vadd.f32 %v3338_v16, %v2443_v13  ;;  %v3339_v19 = vpop.f32.mrb[52].mxu1  ;;  %3787 = vmatprep.subr.bf16.mxu1 %v3786_v2  ;;  %v2668_v15 = vmax.f32 %v2582_v10, %v2652_v18 }
 0x661   : > { %v3340_v20 = vpop.f32.mrb[53].mxu1  ;;  %3789 = vmatpush3.bf16.msra.mxu1 %v3786_v2 }
 0x662   : > { %v2653_v56 = vmul.f32 0.01, %v2587_v41  ;;  %v3341_v31 = vadd.f32 %v3340_v20, %v3339_v19  ;;  %v2488_v19 = vpop.permute.xlu0 %2487 }
 0x664   : > { %v2669_v14 = vmax.f32 %v2587_v41, %v2653_v56  ;;  %v2592_v47 = vadd.f32 %v3341_v31, %v2448_v21  ;;  %v3342_v3 = vpop.f32.mrb[54].mxu1 }
 0x665   : > { %v3343_v51 = vpop.f32.mrb[55].mxu1 }
 0x666   : > { %v3344_v39 = vadd.f32 %v3343_v51, %v3342_v3  ;;  %v3790_v17 = vpack.c.bf16 %v2669_v14, %v2668_v15  ;;  %v2654_v4 = vmul.f32 0.01, %v2592_v47  ;;  %v2493_v3 = vpop.permute.xlu1 %2492 }
 0x668   : > { %v2597_v59 = vadd.f32 %v3344_v39, %v2453_v22  ;;  %v3345_v23 = vpop.f32.mrb[56].mxu1  ;;  %3791 = vmatprep.subr.bf16.mxu1 %v3790_v17  ;;  %v2670_v27 = vmax.f32 %v2592_v47, %v2654_v4 }
 0x669   : > { %v3346_v24 = vpop.f32.mrb[57].mxu1  ;;  %3793 = vmatpush3.bf16.msra.mxu1 %v3790_v17 }
 0x66a   : > { %v2655_v25 = vmul.f32 0.01, %v2597_v59  ;;  %v3347_v8 = vadd.f32 %v3346_v24, %v3345_v23  ;;  %v2498_v23 = vpop.permute.xlu0 %2497 }
 0x66c   : > { %v2671_v28 = vmax.f32 %v2597_v59, %v2655_v25  ;;  %v2602_v34 = vadd.f32 %v3347_v8, %v2458_v57  ;;  %v3348_v29 = vpop.f32.mrb[58].mxu1 }
 0x66d   : > { %v3349_v32 = vpop.f32.mrb[59].mxu1 }
 0x66e   : > { %v3350_v12 = vadd.f32 %v3349_v32, %v3348_v29  ;;  %v3794_v33 = vpack.c.bf16 %v2671_v28, %v2670_v27  ;;  %v2656_v30 = vmul.f32 0.01, %v2602_v34  ;;  %v2503_v29 = vpop.permute.xlu1 %2502 }
 0x670   : > { %v2607_v36 = vadd.f32 %v3350_v12, %v2463_v35  ;;  %v3351_v62 = vpop.f32.mrb[60].mxu1  ;;  %3795 = vmatprep.subr.bf16.mxu1 %v3794_v33  ;;  %v2672_v43 = vmax.f32 %v2602_v34, %v2656_v30 }
 0x671   : > { %v3352_v61 = vpop.f32.mrb[61].mxu1  ;;  %3797 = vmatpush3.bf16.msra.mxu1 %v3794_v33 }
 0x672   : > { %v2657_v38 = vmul.f32 0.01, %v2607_v36  ;;  %v3353_v40 = vadd.f32 %v3352_v61, %v3351_v62  ;;  %v2683_v62 = vld [vmem:[%s5280_s13 + $0x8] sm:$0xff]  ;;  %v2684_v61 = vld [vmem:[%s5280_s13 + $0x10] sm:$0xff] }
 0x674   : > { %v2673_v7 = vmax.f32 %v2607_v36, %v2657_v38  ;;  %v2612_v42 = vadd.f32 %v3353_v40, %v2468_v37  ;;  %v3354_v44 = vpop.f32.mrb[62].mxu1  ;;  %v2685_v38 = vld [vmem:[%s5280_s13 + $0x18] sm:$0xff]  ;;  %v2686_v40 = vld [vmem:[%s5280_s13 + $0x20] sm:$0xff]  ;;  %v2687_v37 = vld [vmem:[%s5280_s13 + $0x28] sm:$0xff] }
 0x675   : > { %v3355_v45 = vpop.f32.mrb[63].mxu1 }
 0x676   : > { %v3356_v49 = vadd.f32 %v3355_v45, %v3354_v44  ;;  %v3798_v0 = vpack.c.bf16 %v2673_v7, %v2672_v43  ;;  %v2658_v46 = vmul.f32 0.01, %v2612_v42  ;;  %v2688_v43 = vld [vmem:[%s5280_s13 + $0x30] sm:$0xff]  ;;  %v2689_v7 = vld [vmem:[%s5280_s13 + $0x38] sm:$0xff]  ;;  %v2706_v44 = vpop.permute.xlu1 %2705  ;;  %v2701_v45 = vpop.permute.xlu0 %2700 }
 0x678   : > { %v2617_v9 = vadd.f32 %v3356_v49, %v2473_v55  ;;  %v3357_v54 = vpop.f32.mrb[64].mxu1  ;;  %3799 = vmatprep.subr.bf16.mxu1 %v3798_v0  ;;  %v2674_v1 = vmax.f32 %v2612_v42, %v2658_v46  ;;  %v2851_v42 = vld [vmem:[%s5282_s15] sm:$0xff] }
 0x679   : > { %v3358_v60 = vpop.f32.mrb[65].mxu1  ;;  %3801 = vmatpush3.bf16.msra.mxu1 %v3798_v0 }
 0x67a   : > { %v2659_v58 = vmul.f32 0.01, %v2617_v9  ;;  %v3359_v63 = vadd.f32 %v3358_v60, %v3357_v54  ;;  %v2716_v49 = vpop.permute.xlu1 %2715  ;;  %v2711_v55 = vpop.permute.xlu0 %2710 }
 0x67c   : > { %v2675_v5 = vmax.f32 %v2617_v9, %v2659_v58  ;;  %v2622_v48 = vadd.f32 %v3359_v63, %v2478_v53  ;;  %v3360_v52 = vpop.f32.mrb[66].mxu1 }
 0x67d   : > { %v3361_v6 = vpop.f32.mrb[67].mxu1 }
 0x67e   : > { %v3362_v26 = vadd.f32 %v3361_v6, %v3360_v52  ;;  %v3802_v10 = vpack.c.bf16 %v2675_v5, %v2674_v1  ;;  %v2660_v50 = vmul.f32 0.01, %v2622_v48  ;;  %v2726_v53 = vpop.permute.xlu1 %2725  ;;  %v2721_v5 = vpop.permute.xlu0 %2720 }
 0x680   : > { %v2627_v16 = vadd.f32 %v3362_v26, %v2483_v11  ;;  %v3363_v2 = vpop.f32.mrb[68].mxu1  ;;  %3803 = vmatprep.subr.bf16.mxu1 %v3802_v10  ;;  %v2676_v20 = vmax.f32 %v2622_v48, %v2660_v50 }
 0x681   : > { %v3364_v13 = vpop.f32.mrb[69].mxu1  ;;  %3805 = vmatpush3.bf16.msra.mxu1 %v3802_v10 }
 0x682   : > { %v2661_v18 = vmul.f32 0.01, %v2627_v16  ;;  %v3365_v41 = vadd.f32 %v3364_v13, %v3363_v2  ;;  %v2736_v10 = vpop.permute.xlu1 %2735 }
 0x684   : > { %v2677_v56 = vmax.f32 %v2627_v16, %v2661_v18  ;;  %v2632_v31 = vadd.f32 %v3365_v41, %v2488_v19  ;;  %v3366_v21 = vpop.f32.mrb[70].mxu1  ;;  %v2731_v16 = vpop.permute.xlu0 %2730 }
 0x685   : > { %v3367_v15 = vpop.f32.mrb[71].mxu1 }
 0x686   : > { %v3368_v14 = vadd.f32 %v3367_v15, %v3366_v21  ;;  %v3806_v47 = vpack.c.bf16 %v2677_v56, %v2676_v20  ;;  %v2662_v51 = vmul.f32 0.01, %v2632_v31 }
 0x688   : > { %v2637_v39 = vadd.f32 %v3368_v14, %v2493_v3  ;;  %v3369_v17 = vpop.f32.mrb[72].mxu1  ;;  %3807 = vmatprep.subr.bf16.mxu1 %v3806_v47  ;;  %v2678_v24 = vmax.f32 %v2632_v31, %v2662_v51 }
 0x689   : > { %v3370_v22 = vpop.f32.mrb[73].mxu1  ;;  %3809 = vmatpush3.bf16.msra.mxu1 %v3806_v47 }
 0x68a   : > { %v2663_v4 = vmul.f32 0.01, %v2637_v39  ;;  %v3371_v59 = vadd.f32 %v3370_v22, %v3369_v17  ;;  %v2853_v17 = vld [vmem:[%s5282_s15 + $0x10] sm:$0xff]  ;;  %v2854_v22 = vld [vmem:[%s5282_s15 + $0x18] sm:$0xff] }
 0x68c   : > { %v2679_v25 = vmax.f32 %v2637_v39, %v2663_v4  ;;  %v2642_v8 = vadd.f32 %v3371_v59, %v2498_v23  ;;  %v3372_v57 = vpop.f32.mrb[74].mxu1  ;;  %v2852_v39 = vld [vmem:[%s5282_s15 + $0x8] sm:$0xff]  ;;  %v2980_v4 = vld [vmem:[%s5284_s17] sm:$0xff]  ;;  %v2867_v59 = vpop.permute.xlu1 %2866 }
 0x68d   : > { %v3373_v27 = vpop.f32.mrb[75].mxu1  ;;  %v2862_v23 = vpop.permute.xlu0 %2861 }
 0x68e   : > { %v3374_v28 = vadd.f32 %v3373_v27, %v3372_v57  ;;  %v3810_v34 = vpack.c.bf16 %v2679_v25, %v2678_v24  ;;  %v2664_v32 = vmul.f32 0.01, %v2642_v8 }
 0x690   : > { %v2647_v12 = vadd.f32 %v3374_v28, %v2503_v29  ;;  %3811 = vmatprep.subr.bf16.mxu1 %v3810_v34  ;;  %v2680_v35 = vmax.f32 %v2642_v8, %v2664_v32  ;;  %v2877_v27 = vpop.permute.xlu1 %2876 }
 0x691   : > { %3813 = vmatpush3.bf16.msra.mxu1 %v3810_v34  ;;  %v2872_v34 = vpop.permute.xlu0 %2871 }
 0x692   : > { %v2665_v33 = vmul.f32 0.01, %v2647_v12 }
 0x694   : > { %v2681_v30 = vmax.f32 %v2647_v12, %v2665_v33 }
 0x696   : > { %v3814_v36 = vpack.c.bf16 %v2681_v30, %v2680_v35 }
 0x698   : > { %3815 = vmatprep.subr.bf16.mxu1 %v3814_v36 }
 0x699   : > { %3817 = vmatpush3.bf16.msra.mxu1 %v3814_v36 }
 0x69c   : > { %3600 = vmatmul.mubr.f32.vlgmr.msra.gmra.mrb[76].mxu1 %v2683_v62 }
 0x69d   : > { %3602 = vmatprep.mubr.f32.mxu1 %v2684_v61 }
 0x6a0   : > { %3603 = vmatmul.mubr.f32.gmra.mrb[78].mxu1 %v2685_v38  ;;  %v2981_v38 = vld [vmem:[%s5284_s17 + $0x8] sm:$0x1] }
 0x6a1   : > { %3605 = vmatprep.mubr.f32.mxu1 %v2686_v40  ;;  %v2992_v40 = vpop.permute.xlu1 %2991 }
 0x6a4   : > { %3606 = vmatmul.mubr.f32.gmra.mrb[80].mxu1 %v2687_v37 }
 0x6a5   : > { %3608 = vmatprep.mubr.f32.mxu1 %v2688_v43  ;;  %v2987_v43 = vpop.permute.xlu0 %2986 }
 0x6a8   : > { %3609 = vmatmul.mubr.f32.gmra.mrb[82].mxu1 %v2689_v7 }
 0x6a9   : > { %3627 = vmatprep.mubr.msk.f32.mxu1 %vm1093_vm5, %v2851_v42 }
 0x76f   : > { %v3601_v0 = vpop.f32.mrb[76].mxu1 }
 0x770   : > { %v2810_v46 = vadd.f32 %v3601_v0, %v2706_v44  ;;  %v2804_v9 = vpop.f32.mrb[77].mxu1 }
 0x771   : > { %v2805_v54 = vadd.f32 %v2804_v9, %v2701_v45 }
 0x772   : > { %3889 = vtanh.f32 %v2810_v46 }
 0x773   : > { %3891 = vtanh.f32 %v2805_v54  ;;  %v3604_v60 = vpop.f32.mrb[78].mxu1 }
 0x774   : > { %v2820_v58 = vadd.f32 %v3604_v60, %v2716_v49  ;;  %v2814_v63 = vpop.f32.mrb[79].mxu1 }
 0x775   : > { %v2815_v1 = vadd.f32 %v2814_v63, %v2711_v55 }
 0x776   : > { %3893 = vtanh.f32 %v2820_v58 }
 0x777   : > { %3895 = vtanh.f32 %v2815_v1  ;;  %v3607_v48 = vpop.f32.mrb[80].mxu1 }
 0x778   : > { %v2830_v52 = vadd.f32 %v3607_v48, %v2726_v53  ;;  %v2824_v6 = vpop.f32.mrb[81].mxu1 }
 0x779   : > { %v2825_v26 = vadd.f32 %v2824_v6, %v2721_v5 }
 0x77a   : > { %3897 = vtanh.f32 %v2830_v52 }
 0x77b   : > { %3899 = vtanh.f32 %v2825_v26  ;;  %v3610_v11 = vpop.f32.mrb[82].mxu1 }
 0x77c   : > { %v3890_v50 = vpop.eup %3889  ;;  %v2840_v2 = vadd.f32 %v3610_v11, %v2736_v10  ;;  %v2834_v13 = vpop.f32.mrb[83].mxu1 }
 0x77d   : > { %v3892_v18 = vpop.eup %3891  ;;  %v2835_v41 = vadd.f32 %v2834_v13, %v2731_v16 }
 0x77e   : > { %3901 = vtanh.f32 %v2840_v2  ;;  %v3818_v19 = vpack.c.bf16 %v3890_v50, %v3892_v18 }
 0x77f   : > { %3903 = vtanh.f32 %v2835_v41 }
 0x780   : > { %v3894_v20 = vpop.eup %3893  ;;  %3819 = vmatprep.subr.bf16.mxu1 %v3818_v19 }
 0x781   : > { %v3896_v56 = vpop.eup %3895  ;;  %3821 = vmatpush3.bf16.msra.mxu1 %v3818_v19 }
 0x782   : > { %v3822_v31 = vpack.c.bf16 %v3894_v20, %v3896_v56 }
 0x784   : > { %v3898_v21 = vpop.eup %3897  ;;  %3823 = vmatprep.subr.bf16.mxu1 %v3822_v31 }
 0x785   : > { %v3900_v15 = vpop.eup %3899  ;;  %3825 = vmatpush3.bf16.msra.mxu1 %v3822_v31 }
 0x786   : > { %v3826_v14 = vpack.c.bf16 %v3898_v21, %v3900_v15 }
 0x788   : > { %v3902_v47 = vpop.eup %3901  ;;  %3827 = vmatprep.subr.bf16.mxu1 %v3826_v14 }
 0x789   : > { %v3904_v3 = vpop.eup %3903  ;;  %3829 = vmatpush3.bf16.msra.mxu1 %v3826_v14 }
 0x78a   : > { %v3830_v51 = vpack.c.bf16 %v3902_v47, %v3904_v3 }
 0x78c   : > { %3831 = vmatprep.subr.bf16.mxu1 %v3830_v51 }
 0x78d   : > { %3833 = vmatpush3.bf16.msra.mxu1 %v3830_v51 }
 0x790   : > { %3628 = vmatmul.mubr.msk.f32.vlgmr.msra.gmra.mrb[84].mxu1 %vm1093_vm5, %v2852_v39 }
 0x791   : > { %3630 = vmatprep.mubr.msk.f32.mxu1 %vm1093_vm5, %v2853_v17 }
 0x794   : > { %3631 = vmatmul.mubr.msk.f32.gmra.mrb[86].mxu1 %vm1093_vm5, %v2854_v22 }
 0x795   : > { %3641 = vmatprep.mubr.msk.f32.mxu1 %vm835_vm4, %v2980_v4 }
 0x863   : > { %v3629_v24 = vpop.f32.mrb[84].mxu1 }
 0x864   : > { %v2963_v25 = vadd.f32 %v3629_v24, %v2867_v59  ;;  %v2957_v8 = vpop.f32.mrb[85].mxu1 }
 0x865   : > { %v2958_v57 = vadd.f32 %v2957_v8, %v2862_v23 }
 0x866   : > { %3905 = vtanh.f32 %v2963_v25 }
 0x867   : > { %3907 = vtanh.f32 %v2958_v57  ;;  %v3632_v28 = vpop.f32.mrb[86].mxu1 }
 0x868   : > { %v2973_v29 = vadd.f32 %v3632_v28, %v2877_v27  ;;  %v2967_v32 = vpop.f32.mrb[87].mxu1 }
 0x869   : > { %v2968_v12 = vadd.f32 %v2967_v32, %v2872_v34 }
 0x86a   : > { %3909 = vtanh.f32 %v2973_v29 }
 0x86b   : > { %3911 = vtanh.f32 %v2968_v12 }
 0x870   : > { %v3906_v33 = vpop.eup %3905 }
 0x871   : > { %v3908_v35 = vpop.eup %3907 }
 0x872   : > { %v3834_v30 = vpack.c.bf16 %v3906_v33, %v3908_v35 }
 0x874   : > { %v3910_v36 = vpop.eup %3909  ;;  %3835 = vmatprep.subr.bf16.mxu1 %v3834_v30 }
 0x875   : > { %v3912_v62 = vpop.eup %3911  ;;  %3837 = vmatpush3.bf16.msra.mxu1 %v3834_v30 }
 0x876   : > { %v3838_v61 = vpack.c.bf16 %v3910_v36, %v3912_v62 }
 0x878   : > { %3839 = vmatprep.subr.bf16.mxu1 %v3838_v61 }
 0x879   : > { %3841 = vmatpush3.bf16.msra.mxu1 %v3838_v61 }
 0x87c   : > { %3642 = vmatmul.mubr.msk.f32.vlgmr.msra.gmra.mrb[88].mxu1 %vm835_vm4, %v2981_v38 }
 0x94f   : > { %v3643_v37 = vpop.f32.mrb[88].mxu1 }
 0x950   : > { %v3072_v7 = vadd.f32 %v3643_v37, %v2992_v40  ;;  %v3066_v42 = vpop.f32.mrb[89].mxu1 }
 0x951   : > { %v3067_v44 = vadd.f32 %v3066_v42, %v2987_v43 }
 0x952   : > { %3076 = vst [vmem:[%s638_s25 + $0x8] sm:$0x1] %v3072_v7 }
 0x953   : > { %3075 = vst [vmem:[%s638_s25] sm:$0xff] %v3067_v44 }
 0x954   : > { %3926 = shalt.err (!%p3923_p5)
}
 0x955   : > { %s3927_s25 = scalar_lea.hbm %s5221_s20, 256  ;;  %s3931_s24 = scalar_lea.hbm %s5286_s19, 512 }
 0x956   : > { %p3928_p7 = scmp.ne.s32.totalorder %s5221_s20, %s3927_s25  ;;  %p3932_p12 = scmp.lt.u32.totalorder %s5221_s20, %s5286_s19 }
 0x957   : > { %p3933_p13 = scmp.lt.u32.totalorder %s3931_s24, %s3927_s25  ;;  %p3935_p1 = scmp.lt.u32.totalorder %s3927_s25, %s5221_s20 }
 0x958   : > { %p3929_p10 = pnand %p3928_p7, %p4122_p6 }
 0x959   : > { %p3934_p0 = por %p3933_p13, %p3932_p12 }
 0x95a   : > { %p3930_p11 = pneg %p3929_p10 }
 0x95b   : > { %p3936_p2 = por %p3935_p1, %p3934_p0 }
 0x95d   : > { %p3937_p3 = pnand %p3936_p2, %p3930_p11 }
 0x95f   : > { %3940 = shalt.err (!%p3937_p3)
}
 0x960   : > { %s3981_s5 = smov 128   ;;  %s3982_s4 = smov 256  }
 0x961   : > { %s3983_s27 = smov 8  }
 0x962   : > { %3842 = dma.vmem_to_hbm [thread:$0]  (%p4122_p6), %s5216_s28, 256, %s5221_s20, %s5225_s2, %s3981_s5, %s3982_s4, %s3983_s27  }
 0x963 PF: > { %s3105_s23 = sand.u32 1, %s3963_s0   ;;  %p3845_p4 = pnand %p3160_p9, %p4126_p8 }
 0x964   : > { %s3106_s25 = scalar_lea.sflag [#allocation4], %s3105_s23 }
 0x965   : > { %3958 = dma.done.wait (!%p3845_p4), %s3106_s25, 256  }
 0x966   : > { %3960 = vsyncadd (!%p3845_p4), %s3106_s25, 4294967040  ;;  %s5319_s21 = sld [smem:[#allocation7_spill]]  ;;  %s5320_s24 = sld [smem:[#allocation6_spill]] }
 0x967   : > { %s5321_s20 = sld [smem:[#allocation8_spill]]  ;;  %s5322_s0 = smov %s3967_s30 }
 0x96c   : > { %p29_p5 = scmp.ge.s32.totalorder %s5319_s21, 4   ;;  %s5323_s30 = smov %s5320_s24 }
 0x96e   :  { %31 = sbr.rel (!%p29_p5) target bundleno = 10 (0xa), region = 174 }
 0x975   :  { %3111 = vsyncpa [#allocation4], 1 }
 0x976   :  { %3113 = vsyncpa [#allocation4 + $0x1], 1 }

</bundles_post_ra>
